<compile_context>
chip_gen: v7x
topology: tpu7x:2x2x1
jax: 0.10.0
libtpu: 0.0.40
codegen_flags: <defaults>
</compile_context>

<pallas_src>
import jax
import jax.numpy as jnp
from jax.experimental import pallas as pl
from jax.experimental.pallas import tpu as pltpu

BN_EPS = 1e-5
LANE = 128
MXU_DTYPE = jnp.bfloat16      # MXU operand dtype (review: bf16 on v5e/v6e/v7x)
INTER_DTYPE = jnp.bfloat16    # dtype of the conv1 -> conv2 intermediate in HBM


def _round_up(x, m):
    return ((x + m - 1) // m) * m


def _pick_row_tile(batch, height, width):
    """Rows of output per grid step.  Keep the flattened matmul M dim (TH*W)
    near ~512 rows but make sure the (N, H-tiles) grid has >= 4 steps so the
    double-buffer pipeline overlaps and both v7x cores get several steps."""
    if height % 8 != 0:
        return height                                  # whole-image fallback
    cands = [t for t in range(8, height + 1, 8) if height % t == 0]
    if not cands:
        return height

    def score(t):
        steps = batch * (height // t)
        return (steps < 4, abs(t * width - 512), t)

    return min(cands, key=score)


_COMPILER_PARAMS = pltpu.CompilerParams(
    dimension_semantics=("parallel", "parallel"),   # batch x row-tiles
    vmem_limit_bytes=48 * 1024 * 1024,              # sized for v7x's 64 MiB VMEM
)


# ---------------------------------------------------------------------------
# Conv (+ optional fused BN+ReLU prologue) kernel
# ---------------------------------------------------------------------------
def _conv_impl(xm_ref, xt_ref, xb_ref, w_ref, y_ref, stat_ref, xpad_ref,
               scale_ref, shift_ref):
    """One (batch, row-tile) step of a 3x3 conv.

    xm_ref:   (1, TH, W, Cin_p)  main input rows (raw previous-layer output)
    xt_ref:   (1, 1,  W, Cin_p)  row above the tile (clamped; zeroed at border)
    xb_ref:   (1, 1,  W, Cin_p)  row below the tile (clamped; zeroed at border)
    w_ref:    (3, 3, Cin_p, Cout_p) weights, bf16
    y_ref:    (1, TH, W, Cout_p) raw conv output (pre-BN)
    stat_ref: (1, 1, 2, Cout_p)  per-step partial [sum, sum_sq] over TH*W rows
    xpad_ref: VMEM scratch (TH+2, W+2, Cin_p) f32 — zero-bordered input tile
    scale/shift_ref: (1, 1, Cin_p) folded BN of the *previous* layer, or None
    """
    TH, W, cin_p = xm_ref.shape[1], xm_ref.shape[2], xm_ref.shape[3]
    cout_p = y_ref.shape[3]
    h_id = pl.program_id(1)
    n_h = pl.num_programs(1)

    def prologue(v, gate=None):
        v = v.astype(jnp.float32)
        if scale_ref is not None:                      # fused BN+ReLU of layer-1
            v = jnp.maximum(v * scale_ref[...] + shift_ref[...], 0.0)
        if gate is not None:                           # zero rows outside image
            v = v * gate
        return v.astype(xpad_ref.dtype)

    # Assemble the zero-bordered tile in VMEM once (no padded activation in HBM).
    zero_col = jnp.zeros((TH + 2, 1, cin_p), xpad_ref.dtype)
    xpad_ref[:, 0:1, :] = zero_col
    xpad_ref[:, W + 1:W + 2, :] = zero_col
    xpad_ref[1:TH + 1, 1:W + 1, :] = prologue(xm_ref[0])
    xpad_ref[0:1, 1:W + 1, :] = prologue(
        xt_ref[0], jnp.where(h_id > 0, 1.0, 0.0))
    xpad_ref[TH + 1:TH + 2, 1:W + 1, :] = prologue(
        xb_ref[0], jnp.where(h_id < n_h - 1, 1.0, 0.0))

    # Stage the three column-shifted bands once (2 sublane-shift copies instead
    # of 6 per-tap relayouts), cast to the MXU operand dtype, then run the 9
    # tap matmuls back-to-back with f32 accumulation.
    cols = [xpad_ref[:, dx:dx + W, :].astype(MXU_DTYPE) for dx in range(3)]
    acc = jnp.zeros((TH * W, cout_p), jnp.float32)
    for dy in range(3):
        for dx in range(3):
            patch = cols[dx][dy:dy + TH].reshape(TH * W, cin_p)
            acc = acc + jnp.dot(patch, w_ref[dy, dx],
                                preferred_element_type=jnp.float32)

    # Partial BN statistics for this step; finalized globally outside the grid
    # so the row/batch tiling can never turn them into per-tile statistics.
    stat_ref[0, 0, 0:1, :] = jnp.sum(acc, axis=0, keepdims=True)
    stat_ref[0, 0, 1:2, :] = jnp.sum(acc * acc, axis=0, keepdims=True)

    y_ref[0] = acc.reshape(TH, W, cout_p).astype(y_ref.dtype)


def _make_conv_kernel(fuse_bnrelu):
    if fuse_bnrelu:
        def kernel(xm, xt, xb, scale, shift, w, y, stat, xpad):
            _conv_impl(xm, xt, xb, w, y, stat, xpad, scale, shift)
    else:
        def kernel(xm, xt, xb, w, y, stat, xpad):
            _conv_impl(xm, xt, xb, w, y, stat, xpad, None, None)
    return kernel


def _conv_call(x, w, scale, shift, th, out_dtype):
    """3x3 conv over x (NHWC, channel-padded), with optional fused BN+ReLU of
    the previous layer applied to x inside the kernel.  Returns (y_raw, stats)
    where stats are per-(batch, row-tile) partial [sum, sum_sq]."""
    N, H, W, cin_p = x.shape
    cout_p = w.shape[-1]
    hb = H // th
    fuse = scale is not None

    def main_map(n, h):
        return (n, h, 0, 0)

    def top_map(n, h):
        return (n, jnp.maximum(h * th - 1, 0), 0, 0)

    def bot_map(n, h):
        return (n, jnp.minimum(h * th + th, H - 1), 0, 0)

    in_specs = [
        pl.BlockSpec((1, th, W, cin_p), main_map),
        pl.BlockSpec((1, 1, W, cin_p), top_map),
        pl.BlockSpec((1, 1, W, cin_p), bot_map),
    ]
    args = [x, x, x]
    if fuse:
        in_specs += [pl.BlockSpec((1, 1, cin_p), lambda n, h: (0, 0, 0)),
                     pl.BlockSpec((1, 1, cin_p), lambda n, h: (0, 0, 0))]
        args += [scale, shift]
    in_specs.append(pl.BlockSpec((3, 3, cin_p, cout_p),
                                 lambda n, h: (0, 0, 0, 0)))
    args.append(w)

    out_shape = (jax.ShapeDtypeStruct((N, H, W, cout_p), out_dtype),
                 jax.ShapeDtypeStruct((N, hb, 2, cout_p), jnp.float32))
    out_specs = (pl.BlockSpec((1, th, W, cout_p), lambda n, h: (n, h, 0, 0)),
                 pl.BlockSpec((1, 1, 2, cout_p), lambda n, h: (n, h, 0, 0)))

    grid_spec = pltpu.PrefetchScalarGridSpec(
        num_scalar_prefetch=0,
        grid=(N, hb),
        in_specs=in_specs,
        out_specs=out_specs,
        scratch_shapes=[pltpu.VMEM((th + 2, W + 2, cin_p), jnp.float32)],
    )
    return pl.pallas_call(
        _make_conv_kernel(fuse),
        out_shape=out_shape,
        grid_spec=grid_spec,
        compiler_params=_COMPILER_PARAMS,
    )(*args)


# ---------------------------------------------------------------------------
# Final BN+ReLU kernel (lane-dense, unpadded output — no masked stores)
# ---------------------------------------------------------------------------
def _bnrelu_kernel(y_ref, scale_ref, shift_ref, o_ref):
    y = y_ref[0].astype(jnp.float32)
    z = jnp.maximum(y * scale_ref[...] + shift_ref[...], 0.0)
    o_ref[0] = z.astype(o_ref.dtype)


def _bnrelu_call(y_raw, scale, shift, th):
    N, H, W, cp = y_raw.shape
    hb = H // th
    return pl.pallas_call(
        _bnrelu_kernel,
        out_shape=jax.ShapeDtypeStruct((N, H, W, cp), jnp.float32),
        grid=(N, hb),
        in_specs=[pl.BlockSpec((1, th, W, cp), lambda n, h: (n, h, 0, 0)),
                  pl.BlockSpec((1, 1, cp), lambda n, h: (0, 0, 0)),
                  pl.BlockSpec((1, 1, cp), lambda n, h: (0, 0, 0))],
        out_specs=pl.BlockSpec((1, th, W, cp), lambda n, h: (n, h, 0, 0)),
        compiler_params=_COMPILER_PARAMS,
    )(y_raw, scale, shift)


# ---------------------------------------------------------------------------
# BN finalize (global batch statistics -> folded per-channel affine)
# ---------------------------------------------------------------------------
def _bn_affine(stats, gamma_p, beta_p, count):
    # NOTE: E[x^2] - mu^2 in f32 can cancel for large-mean activations; fine for
    # conv outputs here (zero-mean-ish, bias-free conv). Clamped for safety.
    s = jnp.sum(stats, axis=(0, 1))                    # (2, Cp)
    mean = s[0] / count
    var = jnp.maximum(s[1] / count - mean * mean, 0.0)  # biased variance
    scale = gamma_p * jax.lax.rsqrt(var + BN_EPS)
    shift = beta_p - mean * scale
    cp = gamma_p.shape[0]
    return (scale.reshape(1, 1, cp).astype(jnp.float32),
            shift.reshape(1, 1, cp).astype(jnp.float32))


# ---------------------------------------------------------------------------
# Module forward
# ---------------------------------------------------------------------------
def inconv_forward(x_nchw, params):
    """x_nchw: (N, Cin, H, W) -> (N, Cout, H, W); same math as the PyTorch
    inconv (double_conv) module in training mode."""
    w1, g1, b1, w2, g2, b2 = params
    N, Cin, H, W = x_nchw.shape
    Cout = w1.shape[-1]
    cin_p = max(_round_up(Cin, LANE), LANE)
    cout_p = max(_round_up(Cout, LANE), LANE)
    th = _pick_row_tile(N, H, W)
    count = N * H * W

    # Module-boundary layout: NCHW -> NHWC, zero-pad channels to the lane width.
    x = jnp.transpose(x_nchw, (0, 2, 3, 1))
    xp = jnp.pad(x, ((0, 0), (0, 0), (0, 0), (0, cin_p - Cin)))

    w1p = jnp.pad(w1, ((0, 0), (0, 0), (0, cin_p - Cin),
                       (0, cout_p - Cout))).astype(MXU_DTYPE)
    w2p = jnp.pad(w2, ((0, 0), (0, 0), (0, cout_p - Cout),
                       (0, cout_p - Cout))).astype(MXU_DTYPE)
    g1p = jnp.pad(g1, (0, cout_p - Cout))
    b1p = jnp.pad(b1, (0, cout_p - Cout))
    g2p = jnp.pad(g2, (0, cout_p - Cout))
    b2p = jnp.pad(b2, (0, cout_p - Cout))

    # conv1 (+stats)  ->  [BN1+ReLU fused into conv2's prologue] conv2 (+stats)
    # -> BN2+ReLU (lane-dense, unpadded output)
    y1_raw, s1 = _conv_call(xp, w1p, None, None, th, INTER_DTYPE)
    scale1, shift1 = _bn_affine(s1, g1p, b1p, count)

    y2_raw, s2 = _conv_call(y1_raw, w2p, scale1, shift1, th, jnp.float32)
    scale2, shift2 = _bn_affine(s2, g2p, b2p, count)

    out_nhwc = _bnrelu_call(y2_raw, scale2, shift2, th)
    out = out_nhwc[..., :Cout]                         # drop channel padding
    return jnp.transpose(out, (0, 3, 1, 2))            # -> NCHW


# ---------------------------------------------------------------------------
# Pure-JAX reference (NCHW), used to validate the kernels.
# ---------------------------------------------------------------------------
def inconv_reference(x, params):
    w1, g1, b1, w2, g2, b2 = params

    def conv_bn_relu(inp, w, g, b):
        y = jax.lax.conv_general_dilated(
            inp, w, (1, 1), 'SAME',
            dimension_numbers=('NCHW', 'HWIO', 'NCHW'),
            precision=jax.lax.Precision.HIGHEST)
        mu = jnp.mean(y, axis=(0, 2, 3), keepdims=True)
        var = jnp.mean((y - mu) ** 2, axis=(0, 2, 3), keepdims=True)
        yn = (y - mu) / jnp.sqrt(var + BN_EPS)
        return jnp.maximum(yn * g.reshape(1, -1, 1, 1) + b.reshape(1, -1, 1, 1), 0.0)

    y = conv_bn_relu(x, w1, g1, b1)
    return conv_bn_relu(y, w2, g2, b2)


if __name__ == "__main__":
    N, IN_CH, OUT_CH, H, W = 2, 4, 8, 16, 16

    key = jax.random.PRNGKey(0)
    kx, k1, k2, k3, k4, k5, k6 = jax.random.split(key, 7)

    x = jax.random.normal(kx, (N, IN_CH, H, W), jnp.float32)

    # Synthetic parameters (Conv2d bias=False; BN affine gamma/beta), HWIO.
    w1 = jax.random.normal(k1, (3, 3, IN_CH, OUT_CH), jnp.float32) * 0.2
    g1 = 1.0 + 0.1 * jax.random.normal(k2, (OUT_CH,), jnp.float32)
    b1 = 0.1 * jax.random.normal(k3, (OUT_CH,), jnp.float32)
    w2 = jax.random.normal(k4, (3, 3, OUT_CH, OUT_CH), jnp.float32) * 0.2
    g2 = 1.0 + 0.1 * jax.random.normal(k5, (OUT_CH,), jnp.float32)
    b2 = 0.1 * jax.random.normal(k6, (OUT_CH,), jnp.float32)

    params = (w1, g1, b1, w2, g2, b2)

    out = jax.block_until_ready(inconv_forward(x, params))
    ref = jax.block_until_ready(inconv_reference(x, params))

    assert out.shape == (N, OUT_CH, H, W), out.shape
    # bf16 MXU operands + bf16 intermediate (f32 accumulation / BN math) per the
    # perf review; tolerance relaxed accordingly vs. the pure-f32 variant.
    max_err = float(jnp.max(jnp.abs(out - ref)))
    assert jnp.allclose(out, ref, atol=3e-2, rtol=3e-2), max_err

    print("KERNEL_OK")
</pallas_src>

<mosaic_0001>
module attributes {stable_mosaic.version = 11 : i64} {
  func.func @kernel(%arg0: i32, %arg1: i32, %arg2: memref<1x8x16x128xf32, #tpu.memory_space<vmem>>, %arg3: memref<1x1x16x128xf32, #tpu.memory_space<vmem>>, %arg4: memref<1x1x16x128xf32, #tpu.memory_space<vmem>>, %arg5: memref<3x3x128x128xbf16, #tpu.memory_space<vmem>>, %arg6: memref<1x8x16x128xbf16, #tpu.memory_space<vmem>>, %arg7: memref<1x1x2x128xf32, #tpu.memory_space<vmem>>, %arg8: memref<10x18x128xf32, #tpu.memory_space<vmem>>) attributes {dimension_semantics = [#tpu.dimension_semantics<parallel>, #tpu.dimension_semantics<parallel>], iteration_bounds = array<i64: 2, 2>, scalar_prefetch = 0 : i64, scratch_operands = 1 : i64, tpu.core_type = #tpu.core_type<tc>, window_params = [{transform_indices = @transform_0, window_bounds = array<i64: 1, 8, 16, 128>}, {transform_indices = @transform_1, window_bounds = array<i64: 1, 1, 16, 128>}, {transform_indices = @transform_2, window_bounds = array<i64: 1, 1, 16, 128>}, {pipeline_mode = #tpu.pipeline_mode<synchronous>, transform_indices = @transform_3, window_bounds = array<i64: 3, 3, 128, 128>}, {transform_indices = @transform_4, window_bounds = array<i64: 1, 8, 16, 128>}, {transform_indices = @transform_5, window_bounds = array<i64: 1, 1, 2, 128>}]} {
    %cst = arith.constant 0.000000e+00 : f32
    %0 = vector.broadcast %cst : f32 to vector<10x1x128xf32>
    %c0 = arith.constant 0 : index
    %c0_0 = arith.constant 0 : index
    %c0_1 = arith.constant 0 : index
    %1 = vector.load %arg8[%c0, %c0_0, %c0_1] : memref<10x18x128xf32, #tpu.memory_space<vmem>>, vector<10x1x128xf32>
    tpu.vector_store %arg8[%c0, %c0_0, %c0_1], %0 {strides = array<i32>} : memref<10x18x128xf32, #tpu.memory_space<vmem>>, vector<10x1x128xf32>,
    %c0_2 = arith.constant 0 : index
    %c17 = arith.constant 17 : index
    %c0_3 = arith.constant 0 : index
    %2 = vector.load %arg8[%c0_2, %c17, %c0_3] : memref<10x18x128xf32, #tpu.memory_space<vmem>>, vector<10x1x128xf32>
    tpu.vector_store %arg8[%c0_2, %c17, %c0_3], %0 {strides = array<i32>} : memref<10x18x128xf32, #tpu.memory_space<vmem>>, vector<10x1x128xf32>,
    %c0_4 = arith.constant 0 : index
    %c0_5 = arith.constant 0 : index
    %c0_6 = arith.constant 0 : index
    %c0_7 = arith.constant 0 : index
    %3 = vector.load %arg2[%c0_4, %c0_5, %c0_6, %c0_7] : memref<1x8x16x128xf32, #tpu.memory_space<vmem>>, vector<1x8x16x128xf32>
    %4 = vector.shape_cast %3 : vector<1x8x16x128xf32> to vector<8x16x128xf32>
    %c1 = arith.constant 1 : index
    %c1_8 = arith.constant 1 : index
    %c0_9 = arith.constant 0 : index
    %5 = vector.load %arg8[%c1, %c1_8, %c0_9] : memref<10x18x128xf32, #tpu.memory_space<vmem>>, vector<8x16x128xf32>
    tpu.vector_store %arg8[%c1, %c1_8, %c0_9], %4 {strides = array<i32>} : memref<10x18x128xf32, #tpu.memory_space<vmem>>, vector<8x16x128xf32>,
    %c0_10 = arith.constant 0 : index
    %c0_11 = arith.constant 0 : index
    %c0_12 = arith.constant 0 : index
    %c0_13 = arith.constant 0 : index
    %6 = vector.load %arg3[%c0_10, %c0_11, %c0_12, %c0_13] : memref<1x1x16x128xf32, #tpu.memory_space<vmem>>, vector<1x1x16x128xf32>
    %7 = vector.shape_cast %6 : vector<1x1x16x128xf32> to vector<1x16x128xf32>
    %c0_i32 = arith.constant 0 : i32
    %8 = arith.cmpi sgt, %arg1, %c0_i32 : i32
    %cst_14 = arith.constant 1.000000e+00 : f32
    %cst_15 = arith.constant 0.000000e+00 : f32
    %9 = arith.select %8, %cst_14, %cst_15 : f32
    %10 = vector.broadcast %9 : f32 to vector<1x16x128xf32>
    %11 = arith.mulf %7, %10 : vector<1x16x128xf32>
    %c0_16 = arith.constant 0 : index
    %c1_17 = arith.constant 1 : index
    %c0_18 = arith.constant 0 : index
    %12 = vector.load %arg8[%c0_16, %c1_17, %c0_18] : memref<10x18x128xf32, #tpu.memory_space<vmem>>, vector<1x16x128xf32>
    tpu.vector_store %arg8[%c0_16, %c1_17, %c0_18], %11 {strides = array<i32>} : memref<10x18x128xf32, #tpu.memory_space<vmem>>, vector<1x16x128xf32>,
    %c0_19 = arith.constant 0 : index
    %c0_20 = arith.constant 0 : index
    %c0_21 = arith.constant 0 : index
    %c0_22 = arith.constant 0 : index
    %13 = vector.load %arg4[%c0_19, %c0_20, %c0_21, %c0_22] : memref<1x1x16x128xf32, #tpu.memory_space<vmem>>, vector<1x1x16x128xf32>
    %14 = vector.shape_cast %13 : vector<1x1x16x128xf32> to vector<1x16x128xf32>
    %c1_i32 = arith.constant 1 : i32
    %15 = arith.cmpi slt, %arg1, %c1_i32 : i32
    %cst_23 = arith.constant 1.000000e+00 : f32
    %cst_24 = arith.constant 0.000000e+00 : f32
    %16 = arith.select %15, %cst_23, %cst_24 : f32
    %17 = vector.broadcast %16 : f32 to vector<1x16x128xf32>
    %18 = arith.mulf %14, %17 : vector<1x16x128xf32>
    %c9 = arith.constant 9 : index
    %c1_25 = arith.constant 1 : index
    %c0_26 = arith.constant 0 : index
    %19 = vector.load %arg8[%c9, %c1_25, %c0_26] : memref<10x18x128xf32, #tpu.memory_space<vmem>>, vector<1x16x128xf32>
    tpu.vector_store %arg8[%c9, %c1_25, %c0_26], %18 {strides = array<i32>} : memref<10x18x128xf32, #tpu.memory_space<vmem>>, vector<1x16x128xf32>,
    %c0_27 = arith.constant 0 : index
    %c0_28 = arith.constant 0 : index
    %c0_29 = arith.constant 0 : index
    %20 = vector.load %arg8[%c0_27, %c0_28, %c0_29] : memref<10x18x128xf32, #tpu.memory_space<vmem>>, vector<10x16x128xf32>
    %21 = arith.truncf %20 : vector<10x16x128xf32> to vector<10x16x128xbf16>
    %c0_30 = arith.constant 0 : index
    %c1_31 = arith.constant 1 : index
    %c0_32 = arith.constant 0 : index
    %22 = vector.load %arg8[%c0_30, %c1_31, %c0_32] : memref<10x18x128xf32, #tpu.memory_space<vmem>>, vector<10x16x128xf32>
    %23 = arith.truncf %22 : vector<10x16x128xf32> to vector<10x16x128xbf16>
    %c0_33 = arith.constant 0 : index
    %c2 = arith.constant 2 : index
    %c0_34 = arith.constant 0 : index
    %24 = vector.load %arg8[%c0_33, %c2, %c0_34] : memref<10x18x128xf32, #tpu.memory_space<vmem>>, vector<10x16x128xf32>
    %25 = arith.truncf %24 : vector<10x16x128xf32> to vector<10x16x128xbf16>
    %cst_35 = arith.constant 0.000000e+00 : f32
    %26 = vector.broadcast %cst_35 : f32 to vector<128x128xf32>
    %27 = vector.extract_strided_slice %21 {offsets = [0, 0, 0], sizes = [8, 16, 128], strides = [1, 1, 1]} : vector<10x16x128xbf16> to vector<8x16x128xbf16>
    %28 = vector.shape_cast %27 : vector<8x16x128xbf16> to vector<128x128xbf16>
    %c0_36 = arith.constant 0 : index
    %c0_37 = arith.constant 0 : index
    %c0_38 = arith.constant 0 : index
    %c0_39 = arith.constant 0 : index
    %29 = vector.load %arg5[%c0_36, %c0_37, %c0_38, %c0_39] : memref<3x3x128x128xbf16, #tpu.memory_space<vmem>>, vector<1x1x128x128xbf16>
    %30 = vector.shape_cast %29 : vector<1x1x128x128xbf16> to vector<128x128xbf16>
    %cst_40 = arith.constant dense<0.000000e+00> : vector<128x128xf32>
    %31 = tpu.matmul %28, %30, %cst_40 {dimension_numbers = #tpu.dot_dimension_numbers<[1], [0], [0], [1], [0, 0, 1, 1], [], []>} : vector<128x128xbf16>, vector<128x128xbf16>, vector<128x128xf32> -> vector<128x128xf32>
    %32 = arith.addf %26, %31 : vector<128x128xf32>
    %33 = vector.extract_strided_slice %23 {offsets = [0, 0, 0], sizes = [8, 16, 128], strides = [1, 1, 1]} : vector<10x16x128xbf16> to vector<8x16x128xbf16>
    %34 = vector.shape_cast %33 : vector<8x16x128xbf16> to vector<128x128xbf16>
    %c0_41 = arith.constant 0 : index
    %c1_42 = arith.constant 1 : index
    %c0_43 = arith.constant 0 : index
    %c0_44 = arith.constant 0 : index
    %35 = vector.load %arg5[%c0_41, %c1_42, %c0_43, %c0_44] : memref<3x3x128x128xbf16, #tpu.memory_space<vmem>>, vector<1x1x128x128xbf16>
    %36 = vector.shape_cast %35 : vector<1x1x128x128xbf16> to vector<128x128xbf16>
    %cst_45 = arith.constant dense<0.000000e+00> : vector<128x128xf32>
    %37 = tpu.matmul %34, %36, %cst_45 {dimension_numbers = #tpu.dot_dimension_numbers<[1], [0], [0], [1], [0, 0, 1, 1], [], []>} : vector<128x128xbf16>, vector<128x128xbf16>, vector<128x128xf32> -> vector<128x128xf32>
    %38 = arith.addf %32, %37 : vector<128x128xf32>
    %39 = vector.extract_strided_slice %25 {offsets = [0, 0, 0], sizes = [8, 16, 128], strides = [1, 1, 1]} : vector<10x16x128xbf16> to vector<8x16x128xbf16>
    %40 = vector.shape_cast %39 : vector<8x16x128xbf16> to vector<128x128xbf16>
    %c0_46 = arith.constant 0 : index
    %c2_47 = arith.constant 2 : index
    %c0_48 = arith.constant 0 : index
    %c0_49 = arith.constant 0 : index
    %41 = vector.load %arg5[%c0_46, %c2_47, %c0_48, %c0_49] : memref<3x3x128x128xbf16, #tpu.memory_space<vmem>>, vector<1x1x128x128xbf16>
    %42 = vector.shape_cast %41 : vector<1x1x128x128xbf16> to vector<128x128xbf16>
    %cst_50 = arith.constant dense<0.000000e+00> : vector<128x128xf32>
    %43 = tpu.matmul %40, %42, %cst_50 {dimension_numbers = #tpu.dot_dimension_numbers<[1], [0], [0], [1], [0, 0, 1, 1], [], []>} : vector<128x128xbf16>, vector<128x128xbf16>, vector<128x128xf32> -> vector<128x128xf32>
    %44 = arith.addf %38, %43 : vector<128x128xf32>
    %45 = vector.extract_strided_slice %21 {offsets = [1, 0, 0], sizes = [8, 16, 128], strides = [1, 1, 1]} : vector<10x16x128xbf16> to vector<8x16x128xbf16>
    %46 = vector.shape_cast %45 : vector<8x16x128xbf16> to vector<128x128xbf16>
    %c1_51 = arith.constant 1 : index
    %c0_52 = arith.constant 0 : index
    %c0_53 = arith.constant 0 : index
    %c0_54 = arith.constant 0 : index
    %47 = vector.load %arg5[%c1_51, %c0_52, %c0_53, %c0_54] : memref<3x3x128x128xbf16, #tpu.memory_space<vmem>>, vector<1x1x128x128xbf16>
    %48 = vector.shape_cast %47 : vector<1x1x128x128xbf16> to vector<128x128xbf16>
    %cst_55 = arith.constant dense<0.000000e+00> : vector<128x128xf32>
    %49 = tpu.matmul %46, %48, %cst_55 {dimension_numbers = #tpu.dot_dimension_numbers<[1], [0], [0], [1], [0, 0, 1, 1], [], []>} : vector<128x128xbf16>, vector<128x128xbf16>, vector<128x128xf32> -> vector<128x128xf32>
    %50 = arith.addf %44, %49 : vector<128x128xf32>
    %51 = vector.extract_strided_slice %23 {offsets = [1, 0, 0], sizes = [8, 16, 128], strides = [1, 1, 1]} : vector<10x16x128xbf16> to vector<8x16x128xbf16>
    %52 = vector.shape_cast %51 : vector<8x16x128xbf16> to vector<128x128xbf16>
    %c1_56 = arith.constant 1 : index
    %c1_57 = arith.constant 1 : index
    %c0_58 = arith.constant 0 : index
    %c0_59 = arith.constant 0 : index
    %53 = vector.load %arg5[%c1_56, %c1_57, %c0_58, %c0_59] : memref<3x3x128x128xbf16, #tpu.memory_space<vmem>>, vector<1x1x128x128xbf16>
    %54 = vector.shape_cast %53 : vector<1x1x128x128xbf16> to vector<128x128xbf16>
    %cst_60 = arith.constant dense<0.000000e+00> : vector<128x128xf32>
    %55 = tpu.matmul %52, %54, %cst_60 {dimension_numbers = #tpu.dot_dimension_numbers<[1], [0], [0], [1], [0, 0, 1, 1], [], []>} : vector<128x128xbf16>, vector<128x128xbf16>, vector<128x128xf32> -> vector<128x128xf32>
    %56 = arith.addf %50, %55 : vector<128x128xf32>
    %57 = vector.extract_strided_slice %25 {offsets = [1, 0, 0], sizes = [8, 16, 128], strides = [1, 1, 1]} : vector<10x16x128xbf16> to vector<8x16x128xbf16>
    %58 = vector.shape_cast %57 : vector<8x16x128xbf16> to vector<128x128xbf16>
    %c1_61 = arith.constant 1 : index
    %c2_62 = arith.constant 2 : index
    %c0_63 = arith.constant 0 : index
    %c0_64 = arith.constant 0 : index
    %59 = vector.load %arg5[%c1_61, %c2_62, %c0_63, %c0_64] : memref<3x3x128x128xbf16, #tpu.memory_space<vmem>>, vector<1x1x128x128xbf16>
    %60 = vector.shape_cast %59 : vector<1x1x128x128xbf16> to vector<128x128xbf16>
    %cst_65 = arith.constant dense<0.000000e+00> : vector<128x128xf32>
    %61 = tpu.matmul %58, %60, %cst_65 {dimension_numbers = #tpu.dot_dimension_numbers<[1], [0], [0], [1], [0, 0, 1, 1], [], []>} : vector<128x128xbf16>, vector<128x128xbf16>, vector<128x128xf32> -> vector<128x128xf32>
    %62 = arith.addf %56, %61 : vector<128x128xf32>
    %63 = vector.extract_strided_slice %21 {offsets = [2, 0, 0], sizes = [8, 16, 128], strides = [1, 1, 1]} : vector<10x16x128xbf16> to vector<8x16x128xbf16>
    %64 = vector.shape_cast %63 : vector<8x16x128xbf16> to vector<128x128xbf16>
    %c2_66 = arith.constant 2 : index
    %c0_67 = arith.constant 0 : index
    %c0_68 = arith.constant 0 : index
    %c0_69 = arith.constant 0 : index
    %65 = vector.load %arg5[%c2_66, %c0_67, %c0_68, %c0_69] : memref<3x3x128x128xbf16, #tpu.memory_space<vmem>>, vector<1x1x128x128xbf16>
    %66 = vector.shape_cast %65 : vector<1x1x128x128xbf16> to vector<128x128xbf16>
    %cst_70 = arith.constant dense<0.000000e+00> : vector<128x128xf32>
    %67 = tpu.matmul %64, %66, %cst_70 {dimension_numbers = #tpu.dot_dimension_numbers<[1], [0], [0], [1], [0, 0, 1, 1], [], []>} : vector<128x128xbf16>, vector<128x128xbf16>, vector<128x128xf32> -> vector<128x128xf32>
    %68 = arith.addf %62, %67 : vector<128x128xf32>
    %69 = vector.extract_strided_slice %23 {offsets = [2, 0, 0], sizes = [8, 16, 128], strides = [1, 1, 1]} : vector<10x16x128xbf16> to vector<8x16x128xbf16>
    %70 = vector.shape_cast %69 : vector<8x16x128xbf16> to vector<128x128xbf16>
    %c2_71 = arith.constant 2 : index
    %c1_72 = arith.constant 1 : index
    %c0_73 = arith.constant 0 : index
    %c0_74 = arith.constant 0 : index
    %71 = vector.load %arg5[%c2_71, %c1_72, %c0_73, %c0_74] : memref<3x3x128x128xbf16, #tpu.memory_space<vmem>>, vector<1x1x128x128xbf16>
    %72 = vector.shape_cast %71 : vector<1x1x128x128xbf16> to vector<128x128xbf16>
    %cst_75 = arith.constant dense<0.000000e+00> : vector<128x128xf32>
    %73 = tpu.matmul %70, %72, %cst_75 {dimension_numbers = #tpu.dot_dimension_numbers<[1], [0], [0], [1], [0, 0, 1, 1], [], []>} : vector<128x128xbf16>, vector<128x128xbf16>, vector<128x128xf32> -> vector<128x128xf32>
    %74 = arith.addf %68, %73 : vector<128x128xf32>
    %75 = vector.extract_strided_slice %25 {offsets = [2, 0, 0], sizes = [8, 16, 128], strides = [1, 1, 1]} : vector<10x16x128xbf16> to vector<8x16x128xbf16>
    %76 = vector.shape_cast %75 : vector<8x16x128xbf16> to vector<128x128xbf16>
    %c2_76 = arith.constant 2 : index
    %c2_77 = arith.constant 2 : index
    %c0_78 = arith.constant 0 : index
    %c0_79 = arith.constant 0 : index
    %77 = vector.load %arg5[%c2_76, %c2_77, %c0_78, %c0_79] : memref<3x3x128x128xbf16, #tpu.memory_space<vmem>>, vector<1x1x128x128xbf16>
    %78 = vector.shape_cast %77 : vector<1x1x128x128xbf16> to vector<128x128xbf16>
    %cst_80 = arith.constant dense<0.000000e+00> : vector<128x128xf32>
    %79 = tpu.matmul %76, %78, %cst_80 {dimension_numbers = #tpu.dot_dimension_numbers<[1], [0], [0], [1], [0, 0, 1, 1], [], []>} : vector<128x128xbf16>, vector<128x128xbf16>, vector<128x128xf32> -> vector<128x128xf32>
    %80 = arith.addf %74, %79 : vector<128x128xf32>
    %cst_81 = arith.constant dense<0.000000e+00> : vector<128xf32>
    %81 = vector.multi_reduction <add>, %80, %cst_81 [0] : vector<128x128xf32> to vector<128xf32>
    %82 = vector.shape_cast %81 : vector<128xf32> to vector<1x128xf32>
    %c0_82 = arith.constant 0 : index
    %c0_83 = arith.constant 0 : index
    %c0_84 = arith.constant 0 : index
    %c0_85 = arith.constant 0 : index
    %83 = vector.load %arg7[%c0_82, %c0_83, %c0_84, %c0_85] : memref<1x1x2x128xf32, #tpu.memory_space<vmem>>, vector<1x1x1x128xf32>
    %84 = vector.shape_cast %83 : vector<1x1x1x128xf32> to vector<1x128xf32>
    %85 = vector.shape_cast %82 : vector<1x128xf32> to vector<1x1x1x128xf32>
    tpu.vector_store %arg7[%c0_82, %c0_83, %c0_84, %c0_85], %85 {strides = array<i32>} : memref<1x1x2x128xf32, #tpu.memory_space<vmem>>, vector<1x1x1x128xf32>,
    %86 = arith.mulf %80, %80 : vector<128x128xf32>
    %cst_86 = arith.constant dense<0.000000e+00> : vector<128xf32>
    %87 = vector.multi_reduction <add>, %86, %cst_86 [0] : vector<128x128xf32> to vector<128xf32>
    %88 = vector.shape_cast %87 : vector<128xf32> to vector<1x128xf32>
    %c0_87 = arith.constant 0 : index
    %c0_88 = arith.constant 0 : index
    %c1_89 = arith.constant 1 : index
    %c0_90 = arith.constant 0 : index
    %89 = vector.load %arg7[%c0_87, %c0_88, %c1_89, %c0_90] : memref<1x1x2x128xf32, #tpu.memory_space<vmem>>, vector<1x1x1x128xf32>
    %90 = vector.shape_cast %89 : vector<1x1x1x128xf32> to vector<1x128xf32>
    %91 = vector.shape_cast %88 : vector<1x128xf32> to vector<1x1x1x128xf32>
    tpu.vector_store %arg7[%c0_87, %c0_88, %c1_89, %c0_90], %91 {strides = array<i32>} : memref<1x1x2x128xf32, #tpu.memory_space<vmem>>, vector<1x1x1x128xf32>,
    %92 = vector.shape_cast %80 : vector<128x128xf32> to vector<8x16x128xf32>
    %93 = arith.truncf %92 : vector<8x16x128xf32> to vector<8x16x128xbf16>
    %c0_91 = arith.constant 0 : index
    %c0_92 = arith.constant 0 : index
    %c0_93 = arith.constant 0 : index
    %c0_94 = arith.constant 0 : index
    %94 = vector.load %arg6[%c0_91, %c0_92, %c0_93, %c0_94] : memref<1x8x16x128xbf16, #tpu.memory_space<vmem>>, vector<1x8x16x128xbf16>
    %95 = vector.shape_cast %94 : vector<1x8x16x128xbf16> to vector<8x16x128xbf16>
    %96 = vector.shape_cast %93 : vector<8x16x128xbf16> to vector<1x8x16x128xbf16>
    tpu.vector_store %arg6[%c0_91, %c0_92, %c0_93, %c0_94], %96 {strides = array<i32>} : memref<1x8x16x128xbf16, #tpu.memory_space<vmem>>, vector<1x8x16x128xbf16>,
    return
  }
  func.func @transform_0(%arg0: i32, %arg1: i32) -> (i32, i32, i32, i32) {
    %c0_i32 = arith.constant 0 : i32
    %c0_i32_0 = arith.constant 0 : i32
    %c0_i32_1 = arith.constant 0 : i32
    return %arg0, %arg1, %c0_i32, %c0_i32_0 : i32, i32, i32, i32
  }
  func.func @transform_1(%arg0: i32, %arg1: i32) -> (i32, i32, i32, i32) {
    %c8_i32 = arith.constant 8 : i32
    %0 = arith.muli %arg1, %c8_i32 : i32
    %c1_i32 = arith.constant 1 : i32
    %1 = arith.subi %0, %c1_i32 : i32
    %c0_i32 = arith.constant 0 : i32
    %2 = arith.maxsi %1, %c0_i32 : i32
    %c0_i32_0 = arith.constant 0 : i32
    %c0_i32_1 = arith.constant 0 : i32
    %c0_i32_2 = arith.constant 0 : i32
    return %arg0, %2, %c0_i32_0, %c0_i32_1 : i32, i32, i32, i32
  }
  func.func @transform_2(%arg0: i32, %arg1: i32) -> (i32, i32, i32, i32) {
    %c8_i32 = arith.constant 8 : i32
    %0 = arith.muli %arg1, %c8_i32 : i32
    %c8_i32_0 = arith.constant 8 : i32
    %1 = arith.addi %0, %c8_i32_0 : i32
    %c15_i32 = arith.constant 15 : i32
    %2 = arith.minsi %1, %c15_i32 : i32
    %c0_i32 = arith.constant 0 : i32
    %c0_i32_1 = arith.constant 0 : i32
    %c0_i32_2 = arith.constant 0 : i32
    return %arg0, %2, %c0_i32, %c0_i32_1 : i32, i32, i32, i32
  }
  func.func @transform_3(%arg0: i32, %arg1: i32) -> (i32, i32, i32, i32) {
    %c0_i32 = arith.constant 0 : i32
    %c0_i32_0 = arith.constant 0 : i32
    %c0_i32_1 = arith.constant 0 : i32
    %c0_i32_2 = arith.constant 0 : i32
    %c0_i32_3 = arith.constant 0 : i32
    return %c0_i32, %c0_i32_0, %c0_i32_1, %c0_i32_2 : i32, i32, i32, i32
  }
  func.func @transform_4(%arg0: i32, %arg1: i32) -> (i32, i32, i32, i32) {
    %c0_i32 = arith.constant 0 : i32
    %c0_i32_0 = arith.constant 0 : i32
    %c0_i32_1 = arith.constant 0 : i32
    return %arg0, %arg1, %c0_i32, %c0_i32_0 : i32, i32, i32, i32
  }
  func.func @transform_5(%arg0: i32, %arg1: i32) -> (i32, i32, i32, i32) {
    %c0_i32 = arith.constant 0 : i32
    %c0_i32_0 = arith.constant 0 : i32
    %c0_i32_1 = arith.constant 0 : i32
    return %arg0, %arg1, %c0_i32, %c0_i32_0 : i32, i32, i32, i32
  }
}

</mosaic_0001>

<bundles_post_ra>
// kernel: tpu_custom_call.1
= control target key start
LH: loop header
LB: loop body
LE: loop exit
PB: predicated region body
PF: predicated region fallthrough
CT: control target
= control target key end

     0   :  { %s4581_s0 = inlined_call_operand.hbm [shape: f32[2,16,16,128], index: 0, kind: input, shape index: {}]   ;;  %s4582_s1 = inlined_call_operand.hbm [shape: f32[2,16,16,128], index: 1, kind: input, shape index: {}]   ;;  %s4583_s2 = inlined_call_operand.hbm [shape: f32[2,16,16,128], index: 2, kind: input, shape index: {}]   ;;  %s4584_s3 = inlined_call_operand.hbm [shape: bf16[3,3,128,128], index: 3, kind: input, shape index: {}]   ;;  %s4585_s4 = inlined_call_operand.hbm [shape: bf16[2,16,16,128], index: 4, kind: output, shape index: {0}]   ;;  %s4586_s5 = inlined_call_operand.hbm [shape: f32[2,2,2,128], index: 5, kind: output, shape index: {1}]  }
   0x1   :  { %4615 = sst [smem:[#allocation36_spill]] %s4581_s0 }
   0x2   :  { %4616 = sst [smem:[#allocation37_spill]] %s4582_s1 }
   0x3   :  { %4617 = sst [smem:[#allocation38_spill]] %s4583_s2 }
   0x4   :  { %4618 = sst [smem:[#allocation39_spill]] %s4584_s3 }
   0x5   :  { %4619 = sst [smem:[#allocation40_spill]] %s4585_s4 }
   0x6   :  { %4620 = sst [smem:[#allocation41_spill]] %s4586_s5 }
   0x7   :  { %11 = vsyncpa [#allocation4], 0 }
   0x8   :  { %13 = vsyncpa [#allocation4 + $0x1], 0 }
   0x9   :  { %14 = vsyncpa [#allocation7], 0 }
   0xa   :  { %16 = vsyncpa [#allocation7 + $0x1], 0 }
   0xb   :  { %17 = vsyncpa [#allocation10], 0 }
   0xc   :  { %18 = vsyncpa [#allocation5], 0 }
   0xd   :  { %20 = vsyncpa [#allocation5 + $0x1], 0 }
   0xe   :  { %21 = vsyncpa [#allocation13], 0 }
   0xf   :  { %23 = vsyncpa [#allocation13 + $0x1], 0  ;;  %s3858_s18 = smov 0   ;;  %s3860_s19 = smov 0  }
  0x10   :  { %s3862_s20 = smov 0   ;;  %s3864_s21 = smov 0  }
  0x11   :  { %s3866_s22 = smov 0   ;;  %s3868_s23 = smov 0  }
  0x12   :  { %s3870_s24 = smov 0   ;;  %s3872_s25 = smov 0  }
  0x13   :  { %s3874_s26 = smov 0   ;;  %s3876_s27 = smov 0  }
  0x14   :  { %s3878_s28 = smov 0   ;;  %s3880_s29 = smov 0  }
  0x15   :  { %s3882_s30 = smov 0   ;;  %s3884_s6 = smov 0  }
  0x16 LB: > { %4621 = sst [smem:[#allocation20_spill]] %s3761_s18  ;;  %s38_s7 = sadd.s32 1, %s3805_s29  ;;  %s3813_s6 = sphi %s3884_s6, %s29_s6   ;;  %s3809_s30 = sphi %s3882_s30, %s4694_s30   ;;  %s3805_s29 = sphi %s3880_s29, %s4693_s29   ;;  %s3801_s28 = sphi %s3878_s28, %s4692_s28   ;;  %s3797_s27 = sphi %s3876_s27, %s4700_s27   ;;  %s3793_s26 = sphi %s3874_s26, %s4690_s26   ;;  %s3789_s25 = sphi %s3872_s25, %s4699_s25   ;;  %s3785_s24 = sphi %s3870_s24, %s4698_s24   ;;  %s3781_s23 = sphi %s3868_s23, %s4688_s23   ;;  %s3777_s22 = sphi %s3866_s22, %s4697_s22   ;;  %s3773_s21 = sphi %s3864_s21, %s4696_s21   ;;  %s3769_s20 = sphi %s3862_s20, %s4695_s20   ;;  %s3765_s19 = sphi %s3860_s19, %s4686_s19   ;;  %s3761_s18 = sphi %s3858_s18, %s4685_s18  }
  0x17   : > { %4622 = sst [smem:[#allocation21_spill]] %s3765_s19  ;;  %s41_s8 = sadd.s32 1, %s3809_s30 }
  0x18   : > { %4623 = sst [smem:[#allocation22_spill]] %s3769_s20  ;;  %p39_p0 = scmp.ge.s32.totalorder %s38_s7, 2 }
  0x19   : > { %4624 = sst [smem:[#allocation23_spill]] %s3781_s23  ;;  %p4600_p1 = scmp.eq.s32.totalorder %s3813_s6, 0 }
  0x1a   : > { %4625 = sst [smem:[#allocation24_spill]] %s3793_s26  ;;  %s2503_s9 = sshll.u32 %s3805_s29, 3 }
  0x1b   : > { %4626 = sst [smem:[#allocation25_spill]] %s3797_s27  ;;  %s86_s10 = sadd.s32 1, %s3781_s23 }
  0x1c   : > { %4627 = sst [smem:[#allocation26_spill]] %s3801_s28  ;;  %s4702_s7 = smov (%p39_p0, %s38_s7), 0 }
  0x1d   : > { %4628 = sst [smem:[#allocation27_spill]] %s3805_s29  ;;  %s4704_s8 = smov (!%p39_p0, %s41_s8), %s3809_s30 }
  0x1e   : > { %4629 = sst [smem:[#allocation28_spill]] %s3809_s30  ;;  %s46_s11 = ssub.s32 %s3805_s29, %s4702_s7 }
  0x1f   : > { %4630 = sst [smem:[#allocation29_spill]] %s4702_s7  ;;  %s2504_s12 = sadd.s32 4294967295, %s2503_s9 }
  0x20   : > { %p43_p2 = scmp.ge.s32.totalorder %s4704_s8, 2  ;;  %p75_p3 = scmp.gt.s32.totalorder %s2504_s12, 0 }
  0x21   : > { %s2505_s13 = sshll.u32 %s4702_s7, 3  ;;  %p93_p4 = scmp.ne.s32.totalorder %s3781_s23, %s3777_s22 }
  0x22   : > { %s4706_s8 = smov (%p43_p2, %s4704_s8), 0  ;;  %s4708_s12 = smov (!%p75_p3, %s2504_s12), 0 }
  0x23   : > { %4631 = sst [smem:[#allocation30_spill]] %s4706_s8  ;;  %s3945_s14 = ssub.s32 %s3809_s30, %s4706_s8 }
  0x24   : > { %4632 = sst [smem:[#allocation31_spill]] %s3945_s14  ;;  %s2506_s15 = sadd.s32 4294967295, %s2505_s13 }
  0x25   : > { %s3948_s16 = sor.u32 %s46_s11, %s3945_s14  ;;  %p79_p5 = scmp.gt.s32.totalorder %s2506_s15, 0 }
  0x26   : > { %p3953_p7 = por %p93_p4, %p4600_p1  ;;  %p99_p8 = scmp.ne.s32.totalorder %s3777_s22, %s3773_s21 }
  0x27   : > { %s4710_s15 = smov (!%p79_p5, %s2506_s15), 0  ;;  %s3959_s8 = sadd.s32 8, %s2503_s9 }
  0x28   : > { %4634 = sst [smem:[#allocation32_spill]] %s3959_s8  ;;  %s82_s7 = ssub.s32 %s4708_s12, %s4710_s15 }
  0x29   : > { %s83_s5 = sor.u32 %s82_s7, %s3945_s14  ;;  %s3963_s11 = sadd.s32 8, %s2505_s13 }
  0x2a   : > { %p84_p10 = scmp.eq.s32.totalorder %s83_s5, 0  ;;  %p4599_p12 = scmp.lt.s32.totalorder %s3813_s6, 4 }
  0x2b   : > { %s3971_s28 = sshll.u32 %s3809_s30, 5  ;;  %s273_s27 = sand.u32 1, %s3813_s6  }
  0x2c   : > { %s3968_s4 = scalar_select %p84_p10, %s3781_s23, %s86_s10  }
  0x2d   : > { %s275_s9 = sand.u32 1, %s3781_s23   ;;  %s2520_s18 = sshll.u32 %s4708_s12, 1 }
  0x2e   : > { %4635 = sst [smem:[#allocation33_spill]] %s3968_s4  ;;  %s2517_s2 = sshll.u32 %s275_s9, 4 }
  0x2f   : > { %s287_s15 = sadd.s32 %s2520_s18, %s3971_s28  ;;  %s277_s7 = scalar_lea.vmem [#allocation6], %s2517_s2 }
  0x30   : > { %s2522_s19 = sshll.u32 %s287_s15, 7  ;;  %s290_s13 = sshll.u32 %s277_s7, 4  ;;  %s3981_s13 = int_to_ptr.vmem [resolvable:$true] %s290_s13 }
  0x31   : > { %s4636_s1 = sld [smem:[#allocation37_spill]]  ;;  %p3987_p13 = pnand %p4599_p12, %p3953_p7 }
  0x32   : > { %s3991_s2 = scalar_lea.sflag [#allocation7], %s273_s27 }
  0x33   : > { %p3507_p2 = pneg %p3987_p13 }
  0x37   : > { %s3979_s20 = scalar_lea.hbm %s4636_s1, %s2522_s19  ;;  %s3510_s10 = scalar_lea.hbm %s4636_s1, 8192 }
  0x38   : > { %s3505_s18 = scalar_lea.hbm %s3979_s20, 256  ;;  %p3511_p5 = scmp.lt.u32.totalorder %s3979_s20, %s4636_s1 }
  0x39   : > { %p3506_p0 = scmp.ne.s32.totalorder %s3979_s20, %s3505_s18  ;;  %p3512_p7 = scmp.lt.u32.totalorder %s3510_s10, %s3505_s18 }
  0x3a   : > { %p3514_p11 = scmp.lt.u32.totalorder %s3505_s18, %s3979_s20 }
  0x3b   : > { %p3508_p3 = pnand %p3507_p2, %p3506_p0  ;;  %p3513_p10 = por %p3512_p7, %p3511_p5 }
  0x3d   : > { %p3509_p4 = pneg %p3508_p3  ;;  %p3515_p9 = por %p3514_p11, %p3513_p10 }
  0x3f   : > { %p3516_p12 = pnand %p3515_p9, %p3509_p4 }
  0x41   : > { %3519 = shalt.err (!%p3516_p12)
}
  0x42   : > { %s3520_s27 = scalar_lea.vmem %s3981_s13, 256  ;;  %s3815_s17 = smov [#allocation6]  }
  0x43   : > { %p3521_p0 = scmp.ne.s32.totalorder %s3981_s13, %s3520_s27  ;;  %s3525_s9 = sshll.u32 %s3815_s17, 4  ;;  %s3526_s9 = int_to_ptr.vmem [resolvable:$false] %s3525_s9 }
  0x44   : > { %s3527_s15 = scalar_lea.vmem %s3526_s9, 512  ;;  %p3528_p6 = scmp.lt.s32.totalorder %s3981_s13, %s3526_s9 }
  0x45   : > { %p3523_p3 = pnand %p3521_p0, %p3507_p2  ;;  %p3529_p5 = scmp.lt.s32.totalorder %s3527_s15, %s3520_s27 }
  0x47   : > { %p3524_p1 = pneg %p3523_p3  ;;  %p3530_p7 = por %p3529_p5, %p3528_p6 }
  0x49   : > { %p3531_p11 = pnand %p3530_p7, %p3524_p1 }
  0x4b   : > { %3534 = shalt.err (!%p3531_p11)
}
  0x4c   : > { %s4604_s7 = smov 128   ;;  %s4606_s18 = smov 8  }
  0x4d   : > { %3298 = dma.hbm_to_vmem [thread:$0]  (!%p3987_p13), %s3979_s20, 256, %s3981_s13, %s3991_s2, %s4604_s7, %s4604_s7, %s4606_s18  }
  0x4e   : > { %s4023_s19 = sadd.s32 4294967295, %s3813_s6   ;;  %p2509_p1 = scmp.ge.s32.totalorder %s3813_s6, 1 }
  0x4f   : > { %p4601_p6 = scmp.eq.s32.totalorder %s4023_s19, 0  ;;  %p223_p12 = scmp.lt.s32.totalorder %s3813_s6, 5 }
  0x50   : > { %s3818_s20 = smov [#allocation9]   ;;  %s4641_s3 = sld [smem:[#allocation39_spill]] }
  0x51   : > { %p4034_p2 = por %p99_p8, %p4601_p6  ;;  %p4038_p4 = pnand %p2509_p1, %p223_p12 }
  0x52   : > { %s235_s13 = sshll.u32 %s3818_s20, 4  ;;  %s236_s13 = int_to_ptr.vmem [resolvable:$true] %s235_s13 }
  0x53   : > { %s4638_s8 = scalar_select %p4034_p2, 1, 0 }
  0x54   : > { %s4639_s5 = scalar_select %p4038_p4, 1, 0 }
  0x55   : > { %p3288_p13 = pneg %p4038_p4 }
  0x56   : > { %s3535_s14 = scalar_lea.hbm %s4641_s3, 9216 }
  0x57   : > { %p4046_p10 = pnand %p3288_p13, %p4601_p6  ;;  %p3536_p8 = scmp.ne.s32.totalorder %s4641_s3, %s3535_s14 }
  0x58   : > { %p3542_p7 = scmp.lt.u32.totalorder %s3535_s14, %s4641_s3 }
  0x59   : > { %p3537_p0 = pneg %p4046_p10 }
  0x5b   : > { %p3538_p3 = pnand %p3537_p0, %p3536_p8 }
  0x5d   : > { %p3539_p5 = pneg %p3538_p3 }
  0x5f   : > { %p3544_p11 = pnand %p3542_p7, %p3539_p5 }
  0x61   : > { %3547 = shalt.err (!%p3544_p11)
}
  0x62   : > { %s3548_s20 = scalar_lea.vmem %s236_s13, 9216  ;;  %p3556_p9 = scmp.lt.s32.totalorder %s236_s13, %s236_s13 }
  0x63   : > { %p3549_p1 = scmp.ne.s32.totalorder %s236_s13, %s3548_s20  ;;  %p3557_p6 = scmp.lt.s32.totalorder %s3548_s20, %s3548_s20 }
  0x65   : > { %p3551_p12 = pnand %p3549_p1, %p3537_p0  ;;  %p3558_p2 = por %p3557_p6, %p3556_p9 }
  0x67   : > { %p3552_p13 = pneg %p3551_p12 }
  0x69   : > { %p3559_p4 = pnand %p3558_p2, %p3552_p13 }
  0x6b   : > { %3562 = shalt.err (!%p3559_p4)
}
  0x6c   : > { %s3819_s21 = smov 64   ;;  %s3820_s12 = smov 4  }
  0x6d   : > { %3291 = dma.hbm_to_vmem [thread:$0]  (!%p4046_p10), %s4641_s3, 9216, %s236_s13, [#allocation10], %s3819_s21, %s3819_s21, %s3820_s12  }
  0x6e   : > { %s2502_s17 = sadd.s32 4294967294, %s3813_s6   ;;  %s50_s9 = sadd.s32 1, %s3793_s26 }
  0x6f   : > { %p4642_p6 = scmp.eq.s32.totalorder %s3948_s16, 0  ;;  %p57_p9 = scmp.ne.s32.totalorder %s3793_s26, %s3789_s25 }
  0x70   : > { %p63_p2 = scmp.ne.s32.totalorder %s3789_s25, %s3785_s24  ;;  %p188_p4 = scmp.eq.s32.totalorder %s2502_s17, 3 }
  0x71   : > { %s4071_s15 = scalar_select %p4642_p6, %s3793_s26, %s50_s9  }
  0x72   : > { %s249_s20 = sand.u32 1, %s3793_s26   ;;  %p4644_p8 = scmp.eq.s32.totalorder %s3813_s6, 0 }
  0x73   : > { %4643 = sst [smem:[#allocation34_spill]] %s4071_s15  ;;  %p4645_p3 = scmp.eq.s32.totalorder %s4023_s19, 0 }
  0x74   : > { %p59_p0 = por %p4644_p8, %p57_p9  ;;  %p4647_p7 = scmp.eq.s32.totalorder %s4023_s19, 3 }
  0x75   : > { %p4082_p5 = por %p4645_p3, %p63_p2  ;;  %p4092_p10 = por %p188_p4, %p63_p2 }
  0x76   : > { %p4088_p11 = por %p4647_p7, %p57_p9  ;;  %s2512_s10 = sshll.u32 %s249_s20, 7 }
  0x77   : > { %s4649_s16 = scalar_select %p4092_p10, 1, 0 }
  0x78   : > { %s4648_s13 = scalar_select %p4088_p11, 1, 0 }
  0x79   : > { %4650 = sst [smem:[#allocation35_spill]] %s4649_s16  ;;  %s2633_s21 = sshll.u32 %s3805_s29, 4 }
  0x7a   : > { %s260_s12 = sadd.s32 %s2633_s21, %s3971_s28  ;;  %s253_s14 = scalar_lea.vmem [#allocation3], %s2512_s10 }
  0x7b   : > { %s263_s27 = sshll.u32 %s253_s14, 4  ;;  %s2516_s17 = sshll.u32 %s260_s12, 7  ;;  %s4098_s27 = int_to_ptr.vmem [resolvable:$true] %s263_s27 }
  0x7c   : > { %s4651_s0 = sld [smem:[#allocation36_spill]]  ;;  %p4652_p1 = scmp.lt.s32.totalorder %s3813_s6, 4 }
  0x7d   : > { %s4111_s10 = scalar_lea.sflag [#allocation4], %s249_s20 }
  0x7e   : > { %p4107_p12 = pnand %p4652_p1, %p59_p0 }
  0x80   : > { %p3565_p6 = pneg %p4107_p12 }
  0x82   : > { %s4103_s1 = scalar_lea.hbm %s4651_s0, %s2516_s17  ;;  %s3568_s14 = scalar_lea.hbm %s4651_s0, 8192 }
  0x83   : > { %s3563_s21 = scalar_lea.hbm %s4103_s1, 2048  ;;  %p3569_p4 = scmp.lt.u32.totalorder %s4103_s1, %s4651_s0 }
  0x84   : > { %p3564_p13 = scmp.ne.s32.totalorder %s4103_s1, %s3563_s21  ;;  %p3570_p8 = scmp.lt.u32.totalorder %s3568_s14, %s3563_s21 }
  0x85   : > { %p3572_p3 = scmp.lt.u32.totalorder %s3563_s21, %s4103_s1 }
  0x86   : > { %p3566_p9 = pnand %p3565_p6, %p3564_p13  ;;  %p3571_p0 = por %p3570_p8, %p3569_p4 }
  0x88   : > { %p3567_p2 = pneg %p3566_p9  ;;  %p3573_p7 = por %p3572_p3, %p3571_p0 }
  0x8a   : > { %p3574_p1 = pnand %p3573_p7, %p3567_p2 }
  0x8c   : > { %3577 = shalt.err (!%p3574_p1)
}
  0x8d   : > { %s3578_s20 = scalar_lea.vmem %s4098_s27, 2048  ;;  %s3821_s18 = smov [#allocation3]  }
  0x8e   : > { %p3579_p13 = scmp.ne.s32.totalorder %s4098_s27, %s3578_s20  ;;  %s3583_s12 = sshll.u32 %s3821_s18, 4  ;;  %s3584_s12 = int_to_ptr.vmem [resolvable:$false] %s3583_s12 }
  0x8f   : > { %s3585_s17 = scalar_lea.vmem %s3584_s12, 4096  ;;  %p3586_p11 = scmp.lt.s32.totalorder %s4098_s27, %s3584_s12 }
  0x90   : > { %p3581_p9 = pnand %p3579_p13, %p3565_p6  ;;  %p3587_p4 = scmp.lt.s32.totalorder %s3585_s17, %s3578_s20 }
  0x92   : > { %p3582_p10 = pneg %p3581_p9  ;;  %p3588_p8 = por %p3587_p4, %p3586_p11 }
  0x94   : > { %p3589_p0 = pnand %p3588_p8, %p3582_p10 }
  0x96   : > { %3592 = shalt.err (!%p3589_p0)
}
  0x97   : > { %s4654_s21 = smov 8   ;;  %s4655_s14 = smov 128  }
  0x98   : > { %s4656_s9 = sld [smem:[#allocation22_spill]]  ;;  %s4657_s0 = sld [smem:[#allocation32_spill]] }
  0x99   : > { %s4658_s18 = sld [smem:[#allocation21_spill]]  ;;  %s4659_s12 = sld [smem:[#allocation20_spill]] }
  0x9a   : > { %s4660_s20 = sld [smem:[#allocation31_spill]]  ;;  %p4662_p10 = scmp.lt.s32.totalorder %s3963_s11, 15 }
  0x9b   : > { %3295 = dma.hbm_to_vmem [thread:$0]  (!%p4107_p12), %s4103_s1, 2048, %s4098_s27, %s4111_s10, %s4655_s14, %s4655_s14, %s4654_s21  }
  0x9c   : > { %s4714_s11 = smov (!%p4662_p10, %s3963_s11), 15  ;;  %p4663_p3 = scmp.eq.s32.totalorder %s3813_s6, 0 }
  0x9d   : > { %p4664_p13 = scmp.eq.s32.totalorder %s4023_s19, 0  ;;  %s4666_s23 = sld [smem:[#allocation38_spill]] }
  0x9e   : > { %s122_s3 = sadd.s32 1, %s4656_s9  ;;  %p4661_p11 = scmp.lt.s32.totalorder %s4657_s0, 15 }
  0x9f   : > { %p129_p6 = scmp.ne.s32.totalorder %s4656_s9, %s4658_s18  ;;  %p135_p2 = scmp.ne.s32.totalorder %s4658_s18, %s4659_s12 }
  0xa0   : > { %s4712_s0 = smov (!%p4661_p11, %s4657_s0), 15  ;;  %s302_s30 = sand.u32 1, %s4656_s9  }
  0xa1   : > { %s118_s17 = ssub.s32 %s4712_s0, %s4714_s11  ;;  %p131_p7 = por %p129_p6, %p4663_p3 }
  0xa2   : > { %s119_s29 = sor.u32 %s118_s17, %s4660_s20  ;;  %p4159_p9 = por %p135_p2, %p4664_p13 }
  0xa3   : > { %p120_p1 = scmp.eq.s32.totalorder %s119_s29, 0  ;;  %s2523_s1 = sshll.u32 %s302_s30, 4 }
  0xa4   : > { %s4665_s15 = scalar_select %p4159_p9, 1, 0 }
  0xa5   : > { %s2525_s27 = sshll.u32 %s4712_s0, 1  ;;  %s4716_s9 = smov (!%p120_p1, %s4656_s9), %s122_s3 }
  0xa6   : > { %s314_s10 = sadd.s32 %s2525_s27, %s3971_s28  ;;  %s304_s4 = scalar_lea.vmem [#allocation8], %s2523_s1 }
  0xa7   : > { %s2527_s26 = sshll.u32 %s314_s10, 7  ;;  %s317_s18 = sshll.u32 %s304_s4, 4  ;;  %s4172_s18 = int_to_ptr.vmem [resolvable:$true] %s317_s18 }
  0xa8   : > { %s4667_s16 = smov %s4666_s23  ;;  %s4170_s20 = scalar_lea.hbm %s4666_s23, %s2527_s26 }
  0xa9   : > { %p4668_p12 = scmp.lt.s32.totalorder %s3813_s6, 4  ;;  %s3593_s28 = scalar_lea.hbm %s4170_s20, 256 }
  0xaa   : > { %p3594_p8 = scmp.ne.s32.totalorder %s4170_s20, %s3593_s28  ;;  %s3598_s26 = scalar_lea.hbm %s4667_s16, 8192 }
  0xab   : > { %p4176_p4 = pnand %p4668_p12, %p131_p7  ;;  %p3599_p6 = scmp.lt.u32.totalorder %s4170_s20, %s4667_s16 }
  0xac   : > { %p3600_p2 = scmp.lt.u32.totalorder %s3598_s26, %s3593_s28  ;;  %p3602_p7 = scmp.lt.u32.totalorder %s3593_s28, %s4170_s20 }
  0xad   : > { %p3595_p0 = pneg %p4176_p4 }
  0xae   : > { %p3601_p3 = por %p3600_p2, %p3599_p6 }
  0xaf   : > { %p3596_p11 = pnand %p3595_p0, %p3594_p8 }
  0xb0   : > { %p3603_p1 = por %p3602_p7, %p3601_p3 }
  0xb1   : > { %p3597_p10 = pneg %p3596_p11 }
  0xb3   : > { %p3604_p13 = pnand %p3603_p1, %p3597_p10 }
  0xb5   : > { %3607 = shalt.err (!%p3604_p13)
}
  0xb6   : > { %s3608_s3 = scalar_lea.vmem %s4172_s18, 256  ;;  %s3822_s17 = smov [#allocation8]  }
  0xb7   : > { %p3609_p12 = scmp.ne.s32.totalorder %s4172_s18, %s3608_s3  ;;  %s3613_s1 = sshll.u32 %s3822_s17, 4  ;;  %s3614_s1 = int_to_ptr.vmem [resolvable:$false] %s3613_s1 }
  0xb8   : > { %s3615_s27 = scalar_lea.vmem %s3614_s1, 512  ;;  %p3616_p9 = scmp.lt.s32.totalorder %s4172_s18, %s3614_s1 }
  0xb9   : > { %p3611_p8 = pnand %p3609_p12, %p3595_p0  ;;  %p3617_p6 = scmp.lt.s32.totalorder %s3615_s27, %s3608_s3 }
  0xbb   : > { %p3612_p11 = pneg %p3611_p8  ;;  %p3618_p2 = por %p3617_p6, %p3616_p9 }
  0xbd   : > { %p3619_p3 = pnand %p3618_p2, %p3612_p11 }
  0xbf   : > { %3622 = shalt.err (!%p3619_p3)
}
  0xc0   : > { %3301 = dma.hbm_to_vmem [thread:$0]  (!%p4176_p4), %s4170_s20, 256, %s4172_s18, %s3991_s2, %s4655_s14, %s4655_s14, %s4654_s21  }
  0xc1   : > { %p4670_p0 = scmp.ne.s32.totalorder %s4639_s5, 0 }
  0xc2   : > { %s4212_s10 = sand.u32 (!%p4670_p0), 1, %s3789_s25  }
  0xc3   : > { %329 = sbr.rel (%p4670_p0) target bundleno = 669 (0x29d), region = 36  ;;  %s2529_s12 = sshll.u32 (!%p4670_p0), %s4212_s10, 7 }
  0xc4   : > { %s332_s11 = scalar_lea.sflag (!%p4670_p0), [#allocation4], %s4212_s10  ;;  %s4216_s28 = scalar_lea.vmem (!%p4670_p0), [#allocation3], %s2529_s12 }
  0xca   : > { %3736 = dma.done.wait (%p4082_p5), %s332_s11, 2048  }
  0xcb   : > { %3738 = vsyncadd (%p4082_p5), %s332_s11, 4294965248  ;;  %s340_s2 = sand.u32 1, %s4023_s19   ;;  %s342_s5 = sand.u32 1, %s3777_s22  }
  0xcc   : > { %s4224_s21 = sshll.u32 %s342_s5, 4  ;;  %s341_s14 = scalar_lea.sflag [#allocation7], %s340_s2 }
  0xcd   : > { %s344_s18 = scalar_lea.vmem [#allocation6], %s4224_s21  ;;  %p4671_p9 = scmp.ne.s32.totalorder %s4638_s8, 0 }
  0xcf   : > { %3740 = dma.done.wait (%p4671_p9), %s341_s14, 256  }
  0xd0   : > { %3742 = vsyncadd (%p4671_p9), %s341_s14, 4294967040  ;;  %s4672_s20 = sld [smem:[#allocation21_spill]]  ;;  %p4673_p5 = scmp.ne.s32.totalorder %s4665_s15, 0 }
  0xd6   : > { %s351_s0 = sand.u32 1, %s4672_s20  }
  0xd7   : > { %s4232_s7 = sshll.u32 %s351_s0, 4 }
  0xd8   : > { %s353_s4 = scalar_lea.vmem [#allocation8], %s4232_s7 }
  0xd9   : > { %3744 = dma.done.wait (%p4673_p5), %s341_s14, 256  }
  0xda   : > { %3746 = vsyncadd (%p4673_p5), %s341_s14, 4294967040  ;;  %p4674_p4 = scmp.eq.s32.totalorder %s4023_s19, 0 }
  0xdc   : > { %3748 = dma.done.wait (%p4674_p4), [#allocation10], 9216   ;;  %p4675_p10 = pmov %p4674_p4 }
  0xdd   : > { %v3823_v0 = vmov 0.0   ;;  %s4676_s19 = sld [smem:[#allocation25_spill]]  ;;  %v3433_v1 = vld [vmem:[#allocation9 + $0x40] sm:$0xff]   ;;  %v3435_v3 = vld [vmem:[#allocation9 + $0x48] sm:$0xff]   ;;  %v3437_v5 = vld [vmem:[#allocation9 + $0x50] sm:$0xff]   ;;  %s2533_s23 = sshll.u32 %s4212_s10, 6 }
  0xde   : > { %3750 = vsyncadd (%p4675_p10), [#allocation10], 4294958080  ;;  %410 = vst [vmem:[#allocation2] sm:$0x1] %v3823_v0  ;;  %v3434_v2 = vld [vmem:[#allocation9 + $0x100] sm:$0xff]   ;;  %2842 = vmatprep.subr.bf16.mxu1 %v3433_v1  ;;  %v3436_v4 = vld [vmem:[#allocation9 + $0x108] sm:$0xff]  }
  0xdf   : > { %411 = vst [vmem:[#allocation2 + $0x18] sm:$0x1] %v3823_v0  ;;  %412 = vst [vmem:[#allocation2 + $0x30] sm:$0x1] %v3823_v0  ;;  %2970 = vmatprep.subr.bf16.mxu0 %v3434_v2  ;;  %2843 = vmatpush3.bf16.msra.mxu1 %v3433_v1  ;;  %v3438_v6 = vld [vmem:[#allocation9 + $0x110] sm:$0xff]   ;;  %v3439_v7 = vld [vmem:[#allocation9 + $0x58] sm:$0xff]  }
  0xe0   : > { %413 = vst [vmem:[#allocation2 + $0x48] sm:$0x1] %v3823_v0  ;;  %414 = vst [vmem:[#allocation2 + $0x60] sm:$0x1] %v3823_v0  ;;  %2971 = vmatpush3.bf16.msra.mxu0 %v3434_v2  ;;  %2844 = vmatprep.subr.bf16.mxu1 %v3435_v3  ;;  %v3440_v8 = vld [vmem:[#allocation9 + $0x118] sm:$0xff]   ;;  %v3441_v9 = vld [vmem:[#allocation9 + $0x60] sm:$0xff]  }
  0xe1   : > { %415 = vst [vmem:[#allocation2 + $0x78] sm:$0x1] %v3823_v0  ;;  %416 = vst [vmem:[#allocation2 + $0x90] sm:$0x1] %v3823_v0  ;;  %2972 = vmatprep.subr.bf16.mxu0 %v3436_v4  ;;  %v3442_v10 = vld [vmem:[#allocation9 + $0x120] sm:$0xff]   ;;  %v3443_v11 = vld [vmem:[#allocation9 + $0x68] sm:$0xff]  }
  0xe2   : > { %417 = vst [vmem:[#allocation2 + $0xa8] sm:$0x1] %v3823_v0  ;;  %418 = vst [vmem:[#allocation2 + $0xc0] sm:$0x1] %v3823_v0  ;;  %v3444_v13 = vld [vmem:[#allocation9 + $0x128] sm:$0xff]   ;;  %v463_v14 = vld [vmem:[%s344_s18] sm:$0xff] }
  0xe3   : > { %419 = vst [vmem:[#allocation2 + $0xd8] sm:$0x1] %v3823_v0  ;;  %420 = vst [vmem:[#allocation2 + $0x11] sm:$0x1] %v3823_v0  ;;  %p465_p7 = scmp.gt.s32.totalorder %s4676_s19, 0  ;;  %2845 = vmatpush3.bf16.msra.mxu1 %v3435_v3  ;;  %v464_v15 = vld [vmem:[%s344_s18 + $0x8] sm:$0xff] }
  0xe4   : > { %421 = vst [vmem:[#allocation2 + $0x29] sm:$0x1] %v3823_v0  ;;  %422 = vst [vmem:[#allocation2 + $0x41] sm:$0x1] %v3823_v0  ;;  %2973 = vmatpush3.bf16.msra.mxu0 %v3436_v4  ;;  %2846 = vmatprep.subr.bf16.mxu1 %v3437_v5  ;;  %v430_v16 = vld [vmem:[%s4216_s28] sm:$0xff]  ;;  %v431_v19 = vld [vmem:[%s4216_s28 + $0x8] sm:$0xff] }
  0xe5   : > { %423 = vst [vmem:[#allocation2 + $0x59] sm:$0x1] %v3823_v0  ;;  %424 = vst [vmem:[#allocation2 + $0x71] sm:$0x1] %v3823_v0  ;;  %2974 = vmatprep.subr.bf16.mxu0 %v3438_v6  ;;  %s466_s8 = scalar_select %p465_p7, 1.0, 0.0  ;;  %v533_v20 = vpack.c.bf16 %v431_v19, %v430_v16 }
  0xe6   : > { %425 = vst [vmem:[#allocation2 + $0x89] sm:$0x1] %v3823_v0  ;;  %426 = vst [vmem:[#allocation2 + $0xa1] sm:$0x1] %v3823_v0  ;;  %v432_v21 = vld [vmem:[%s4216_s28 + $0x10] sm:$0xff]  ;;  %v433_v22 = vld [vmem:[%s4216_s28 + $0x18] sm:$0xff] }
  0xe7   : > { %427 = vst [vmem:[#allocation2 + $0xb9] sm:$0x1] %v3823_v0  ;;  %428 = vst [vmem:[#allocation2 + $0xd1] sm:$0x1] %v3823_v0  ;;  %2847 = vmatpush3.bf16.msra.mxu1 %v3437_v5  ;;  %v467_v12 = vstv %s466_s8  ;;  %v3445_v24 = vld [vmem:[#allocation9 + $0x70] sm:$0xff]   ;;  %2986 = vmatprep.mubr.bf16.mxu0 %v533_v20  ;;  %v434_v26 = vld [vmem:[%s4216_s28 + $0x20] sm:$0xff]  ;;  %v4260_v38 = vpack.c.bf16 %v433_v22, %v432_v21 }
  0xe8   : > { %429 = vst [vmem:[#allocation2 + $0xe9] sm:$0x1] %v3823_v0  ;;  %2975 = vmatpush3.bf16.msra.mxu0 %v3438_v6  ;;  %2848 = vmatprep.subr.bf16.mxu1 %v3439_v7  ;;  %v468_v17 = vmul.f32 %v467_v12, %v463_v14  ;;  %v469_v18 = vmul.f32 %v467_v12, %v464_v15  ;;  %447 = vst [vmem:[#allocation2 + $0x19] sm:$0xff] %v430_v16  ;;  %v3446_v25 = vld [vmem:[#allocation9 + $0x130] sm:$0xff]   ;;  %v435_v27 = vld [vmem:[%s4216_s28 + $0x28] sm:$0xff]  ;;  %p474_p1 = scmp.lt.s32.totalorder %s4676_s19, 1 }
  0xe9   : > { %2976 = vmatprep.subr.bf16.mxu0 %v3440_v8  ;;  %448 = vst [vmem:[#allocation2 + $0x21] sm:$0xff] %v431_v19  ;;  %449 = vst [vmem:[#allocation2 + $0x31] sm:$0xff] %v432_v21  ;;  %v3447_v28 = vld [vmem:[#allocation9 + $0x78] sm:$0xff]   ;;  %v436_v29 = vld [vmem:[%s4216_s28 + $0x30] sm:$0xff]  ;;  %v4264_v43 = vpack.c.bf16 %v435_v27, %v434_v26  ;;  %s4418_s26 = scalar_lea.vmem [#allocation11], %s2533_s23  ;;  %s4677_s29 = sld [smem:[#allocation26_spill]] }
  0xea   : > { %470 = vst [vmem:[#allocation2 + $0x1] sm:$0xff] %v468_v17  ;;  %471 = vst [vmem:[#allocation2 + $0x9] sm:$0xff] %v469_v18  ;;  %v532_v23 = vpack.c.bf16 %v469_v18, %v468_v17  ;;  %v437_v30 = vld [vmem:[%s4216_s28 + $0x38] sm:$0xff]  ;;  %v3449_v32 = vld [vmem:[#allocation9] sm:$0xff]   ;;  %s4301_s15 = scalar_select %p474_p1, 1.0, 0.0 }
  0xeb   : > { %2849 = vmatpush3.bf16.msra.mxu1 %v3439_v7  ;;  %450 = vst [vmem:[#allocation2 + $0x39] sm:$0xff] %v433_v22  ;;  %451 = vst [vmem:[#allocation2 + $0x49] sm:$0xff] %v434_v26  ;;  %v3448_v31 = vld [vmem:[#allocation9 + $0x138] sm:$0xff]   ;;  %v438_v33 = vld [vmem:[%s4216_s28 + $0x40] sm:$0xff]  ;;  %v4271_v48 = vpack.c.bf16 %v437_v30, %v436_v29  ;;  %s2650_s30 = sshll.u32 %s4676_s19, 4  ;;  %s2303_s1 = sshll.u32 %s4418_s26, 4  ;;  %s4443_s1 = int_to_ptr.vmem [resolvable:$true] %s2303_s1 }
  0xec   : > { %2977 = vmatpush3.bf16.msra.mxu0 %v3440_v8  ;;  %2850 = vmatprep.subr.bf16.mxu1 %v3441_v9  ;;  %452 = vst [vmem:[#allocation2 + $0x51] sm:$0xff] %v435_v27  ;;  %453 = vst [vmem:[#allocation2 + $0x61] sm:$0xff] %v436_v29  ;;  %v439_v34 = vld [vmem:[%s4216_s28 + $0x48] sm:$0xff]  ;;  %v3450_v35 = vld [vmem:[#allocation9 + $0x140] sm:$0xff]   ;;  %s2282_s21 = scalar_lea.sflag [#allocation5], %s4212_s10  ;;  %s3623_s14 = scalar_lea.vmem %s4443_s1, 1024 }
  0xed   : > { %2978 = vmatprep.subr.bf16.mxu0 %v3442_v10  ;;  %2858 = vmatprep.mubr.bf16.mxu1 %v532_v23  ;;  %454 = vst [vmem:[#allocation2 + $0x69] sm:$0xff] %v437_v30  ;;  %455 = vst [vmem:[#allocation2 + $0x79] sm:$0xff] %v438_v33  ;;  %v440_v36 = vld [vmem:[%s4216_s28 + $0x50] sm:$0xff]  ;;  %v441_v37 = vld [vmem:[%s4216_s28 + $0x58] sm:$0xff]  ;;  %v4274_v51 = vpack.c.bf16 %v439_v34, %v438_v33  ;;  %p3624_p13 = scmp.ne.s32.totalorder %s4443_s1, %s3623_s14  ;;  %p4680_p12 = scmp.ne.s32.totalorder %s4648_s13, 0 }
  0xee   : > { %456 = vst [vmem:[#allocation2 + $0x81] sm:$0xff] %v439_v34  ;;  %457 = vst [vmem:[#allocation2 + $0x91] sm:$0xff] %v440_v36  ;;  %v3451_v39 = vld [vmem:[#allocation9 + $0x8] sm:$0xff]   ;;  %v442_v41 = vld [vmem:[%s4216_s28 + $0x60] sm:$0xff]  ;;  %v4279_v54 = vpack.c.bf16 %v441_v37, %v440_v36  ;;  %s3824_s18 = smov [#allocation11]  }
  0xef   : > { %2851 = vmatpush3.bf16.msra.mxu1 %v3441_v9  ;;  %458 = vst [vmem:[#allocation2 + $0x99] sm:$0xff] %v441_v37  ;;  %v3452_v40 = vld [vmem:[#allocation9 + $0x148] sm:$0xff]   ;;  %459 = vst [vmem:[#allocation2 + $0xa9] sm:$0xff] %v442_v41  ;;  %v444_v44 = vld [vmem:[%s4216_s28 + $0x70] sm:$0xff]  ;;  %s2627_s3 = sshll.u32 %s4677_s29, 5  ;;  %p3625_p8 = pnand %p3624_p13, %p4680_p12 }
  0xf0   : > { %2979 = vmatpush3.bf16.msra.mxu0 %v3442_v10  ;;  %2852 = vmatprep.subr.bf16.mxu1 %v3443_v11  ;;  %v443_v42 = vld [vmem:[%s4216_s28 + $0x68] sm:$0xff]  ;;  %v445_v45 = vld [vmem:[%s4216_s28 + $0x78] sm:$0xff]  ;;  %461 = vst [vmem:[#allocation2 + $0xc1] sm:$0xff] %v444_v44  ;;  %v3453_v46 = vld [vmem:[#allocation9 + $0x10] sm:$0xff]   ;;  %s2300_s17 = sadd.s32 %s2650_s30, %s2627_s3  ;;  %s4678_s28 = sld [smem:[#allocation40_spill]] }
  0xf1   : > { %2980 = vmatprep.subr.bf16.mxu0 %v3444_v13  ;;  %460 = vst [vmem:[#allocation2 + $0xb1] sm:$0xff] %v443_v42  ;;  %462 = vst [vmem:[#allocation2 + $0xc9] sm:$0xff] %v445_v45  ;;  %v3454_v47 = vld [vmem:[#allocation9 + $0x150] sm:$0xff]   ;;  %v3455_v49 = vld [vmem:[#allocation9 + $0x18] sm:$0xff]   ;;  %v4282_v57 = vpack.c.bf16 %v443_v42, %v442_v41  ;;  %v4287_v63 = vpack.c.bf16 %v445_v45, %v444_v44  ;;  %s2628_s27 = sshll.u32 %s2300_s17, 6  ;;  %p3626_p11 = pneg %p3625_p8 }
  0xf2   : > { %v3456_v50 = vld [vmem:[#allocation9 + $0x158] sm:$0xff]   ;;  %v3457_v52 = vld [vmem:[#allocation9 + $0x20] sm:$0xff]   ;;  %v3459_v55 = vld [vmem:[#allocation9 + $0x28] sm:$0xff]   ;;  %s3627_s20 = sshll.u32 %s3824_s18, 4  ;;  %s3628_s20 = int_to_ptr.vmem [resolvable:$false] %s3627_s20 }
  0xf3   : > { %2853 = vmatpush3.bf16.msra.mxu1 %v3443_v11  ;;  %v3458_v53 = vld [vmem:[#allocation9 + $0x160] sm:$0xff]   ;;  %v3460_v56 = vld [vmem:[#allocation9 + $0x168] sm:$0xff]   ;;  %v3461_v58 = vld [vmem:[#allocation9 + $0x30] sm:$0xff]   ;;  %s3629_s0 = scalar_lea.vmem %s3628_s20, 2048  ;;  %p3630_p6 = scmp.lt.s32.totalorder %s4443_s1, %s3628_s20 }
  0xf4   : > { %2981 = vmatpush3.bf16.msra.mxu0 %v3444_v13  ;;  %2854 = vmatprep.subr.bf16.mxu1 %v3445_v24  ;;  %v3462_v59 = vld [vmem:[#allocation9 + $0x170] sm:$0xff]   ;;  %v483_v61 = vld [vmem:[#allocation2 + $0x8] sm:$0xff]  ;;  %v484_v5 = vld [vmem:[#allocation2 + $0x18] sm:$0xff]  ;;  %p3631_p2 = scmp.lt.s32.totalorder %s3629_s0, %s3623_s14 }
  0xf5   : > { %2982 = vmatprep.subr.bf16.mxu0 %v3446_v25  ;;  %v482_v60 = vld [vmem:[#allocation2] sm:$0xff]  ;;  %v3463_v1 = vld [vmem:[#allocation9 + $0x38] sm:$0xff]   ;;  %v3465_v7 = vld [vmem:[#allocation9 + $0x80] sm:$0xff]  }
  0xf6   : > { %v544_v62 = vld [vmem:[#allocation2 + $0x1a] sm:$0xff]  ;;  %v545_v0 = vld [vmem:[#allocation2 + $0x22] sm:$0xff]  ;;  %v502_v3 = vpack.c.bf16 %v483_v61, %v482_v60  ;;  %v546_v8 = vld [vmem:[#allocation2 + $0x32] sm:$0xff]  ;;  %s4679_s2 = smov %s4678_s28  ;;  %s4449_s5 = scalar_lea.hbm %s4678_s28, %s2628_s27 }
  0xf7   : > { %2855 = vmatpush3.bf16.msra.mxu1 %v3445_v24  ;;  %v3464_v2 = vld [vmem:[#allocation9 + $0x178] sm:$0xff]   ;;  %v4290_v4 = vpack.c.bf16 %v545_v0, %v544_v62  ;;  %v485_v6 = vld [vmem:[#allocation2 + $0x20] sm:$0xff]  ;;  %v3466_v10 = vld [vmem:[#allocation9 + $0x180] sm:$0xff]   ;;  %p3632_p3 = por %p3631_p2, %p3630_p6 }
  0xf8   : > { %2983 = vmatpush3.bf16.msra.mxu0 %v3446_v25  ;;  %2856 = vmatprep.subr.bf16.mxu1 %v3447_v28  ;;  %v547_v9 = vld [vmem:[#allocation2 + $0x3a] sm:$0xff]  ;;  %v486_v11 = vld [vmem:[#allocation2 + $0x30] sm:$0xff]  ;;  %v4295_v13 = vpack.c.bf16 %v485_v6, %v484_v5  ;;  %v550_v24 = vld [vmem:[#allocation2 + $0x62] sm:$0xff] }
  0xf9   : > { %2984 = vmatprep.subr.bf16.mxu0 %v3448_v31  ;;  %v487_v12 = vld [vmem:[#allocation2 + $0x38] sm:$0xff]  ;;  %v548_v14 = vld [vmem:[#allocation2 + $0x4a] sm:$0xff]  ;;  %v4297_v15 = vpack.c.bf16 %v547_v9, %v546_v8  ;;  %v3469_v23 = vld [vmem:[#allocation9 + $0x90] sm:$0xff]   ;;  %p3633_p0 = pnand %p3632_p3, %p3626_p11 }
  0xfa   : > { %v549_v16 = vld [vmem:[#allocation2 + $0x52] sm:$0xff]  ;;  %v4303_v19 = vpack.c.bf16 %v487_v12, %v486_v11  ;;  %v551_v25 = vld [vmem:[#allocation2 + $0x6a] sm:$0xff]  ;;  %v3470_v26 = vld [vmem:[#allocation9 + $0x190] sm:$0xff]  }
  0xfb   : > { %2857 = vmatpush3.bf16.msra.mxu1 %v3447_v28  ;;  %v3467_v17 = vld [vmem:[#allocation9 + $0x88] sm:$0xff]   ;;  %v489_v21 = vld [vmem:[#allocation2 + $0x50] sm:$0xff]  ;;  %v4306_v22 = vpack.c.bf16 %v549_v16, %v548_v14  ;;  %v490_v27 = vld [vmem:[#allocation2 + $0x60] sm:$0xff] }
  0xfc   : > { %2985 = vmatpush3.bf16.msra.mxu0 %v3448_v31  ;;  %2874 = vmatprep.subr.bf16.mxu1 %v3449_v32  ;;  %v3468_v18 = vld [vmem:[#allocation9 + $0x188] sm:$0xff]   ;;  %v491_v28 = vld [vmem:[#allocation2 + $0x68] sm:$0xff]  ;;  %v493_v37 = vld [vmem:[#allocation2 + $0x80] sm:$0xff] }
  0xfd   : > { %3002 = vmatprep.subr.bf16.mxu0 %v3450_v35  ;;  %v3471_v30 = vld [vmem:[#allocation9 + $0x98] sm:$0xff]   ;;  %v552_v31 = vld [vmem:[#allocation2 + $0x7a] sm:$0xff]  ;;  %v554_v41 = vld [vmem:[#allocation2 + $0x92] sm:$0xff] }
  0xfe   : > { %2859 = vmatmul.mubr.bf16.vlgmr.msra.gmra.mrb[0].mxu1 %v533_v20  ;;  %v488_v20 = vld [vmem:[#allocation2 + $0x48] sm:$0xff]  ;;  %v492_v36 = vld [vmem:[#allocation2 + $0x78] sm:$0xff]  ;;  %v3474_v44 = vld [vmem:[#allocation9 + $0x1a0] sm:$0xff]  }
  0xff   : > { %2987 = vmatmul.mubr.bf16.vlgmr.msra.gmra.mrb[0].mxu0 %v4260_v38  ;;  %2875 = vmatpush3.bf16.msra.mxu1 %v3449_v32  ;;  %v4311_v29 = vpack.c.bf16 %v489_v21, %v488_v20  ;;  %v4313_v32 = vpack.c.bf16 %v551_v25, %v550_v24  ;;  %v553_v33 = vld [vmem:[#allocation2 + $0x82] sm:$0xff]  ;;  %v555_v42 = vld [vmem:[#allocation2 + $0x9a] sm:$0xff]  ;;  %v494_v45 = vld [vmem:[#allocation2 + $0x90] sm:$0xff] }
 0x100   : > { %3003 = vmatpush3.bf16.msra.mxu0 %v3450_v35  ;;  %2876 = vmatprep.subr.bf16.mxu1 %v3451_v39  ;;  %v3472_v34 = vld [vmem:[#allocation9 + $0x198] sm:$0xff]   ;;  %v4315_v35 = vpack.c.bf16 %v491_v28, %v490_v27  ;;  %v3478_v8 = vld [vmem:[#allocation9 + $0x1b0] sm:$0xff]   ;;  %v3482_v20 = vld [vmem:[#allocation9 + $0x1c0] sm:$0xff]  }
 0x101   : > { %3004 = vmatprep.subr.bf16.mxu0 %v3452_v40  ;;  %2862 = vmatprep.mubr.bf16.mxu1 %v4260_v38  ;;  %v496_v0 = vld [vmem:[#allocation2 + $0xa8] sm:$0xff]  ;;  %v3483_v21 = vld [vmem:[#allocation9 + $0xc8] sm:$0xff]   ;;  %v3485_v24 = vld [vmem:[#allocation9 + $0xd0] sm:$0xff]  }
 0x102   : > { %2990 = vmatprep.mubr.bf16.mxu0 %v4264_v43  ;;  %v558_v5 = vld [vmem:[#allocation2 + $0xc2] sm:$0xff]  ;;  %v543_v11 = vld [vmem:[#allocation2 + $0xa] sm:$0xff] }
 0x103   : > { %2877 = vmatpush3.bf16.msra.mxu1 %v3451_v39  ;;  %v4318_v39 = vpack.c.bf16 %v553_v33, %v552_v31  ;;  %v542_v9 = vld [vmem:[#allocation2 + $0x2] sm:$0xff]  ;;  %v3490_v28 = vld [vmem:[#allocation9 + $0x1e0] sm:$0xff]   ;;  %v3491_v33 = vld [vmem:[#allocation9 + $0xe8] sm:$0xff]  }
 0x104   : > { %3005 = vmatpush3.bf16.msra.mxu0 %v3452_v40  ;;  %2878 = vmatprep.subr.bf16.mxu1 %v3453_v46  ;;  %v3473_v40 = vld [vmem:[#allocation9 + $0xa0] sm:$0xff]   ;;  %v3479_v14 = vld [vmem:[#allocation9 + $0xb8] sm:$0xff]   ;;  %v3486_v25 = vld [vmem:[#allocation9 + $0x1d0] sm:$0xff]  }
 0x105   : > { %3006 = vmatprep.subr.bf16.mxu0 %v3454_v47  ;;  %v3480_v16 = vld [vmem:[#allocation9 + $0x1b8] sm:$0xff]  }
 0x106   : > { %2863 = vmatmul.mubr.bf16.gmra.mrb[4].mxu1 %v4264_v43  ;;  %v3488_v27 = vld [vmem:[#allocation9 + $0x1d8] sm:$0xff]  }
 0x107   : > { %2991 = vmatmul.mubr.bf16.gmra.mrb[4].mxu0 %v4271_v48  ;;  %2879 = vmatpush3.bf16.msra.mxu1 %v3453_v46  ;;  %v495_v46 = vld [vmem:[#allocation2 + $0x98] sm:$0xff]  ;;  %v499_v31 = vld [vmem:[#allocation2 + $0xc8] sm:$0xff] }
 0x108   : > { %3007 = vmatpush3.bf16.msra.mxu0 %v3454_v47  ;;  %2880 = vmatprep.subr.bf16.mxu1 %v3455_v49  ;;  %v556_v47 = vld [vmem:[#allocation2 + $0xaa] sm:$0xff]  ;;  %v4336_v62 = vpack.c.bf16 %v495_v46, %v494_v45 }
 0x109   : > { %3008 = vmatprep.subr.bf16.mxu0 %v3456_v50  ;;  %2866 = vmatprep.mubr.bf16.mxu1 %v4271_v48  ;;  %v3495_v45 = vld [vmem:[#allocation9 + $0xf8] sm:$0xff]  }
 0x10a   : > { %2994 = vmatprep.mubr.bf16.mxu0 %v4274_v51  ;;  %v3496_v46 = vld [vmem:[#allocation9 + $0x1f8] sm:$0xff]  }
 0x10b   : > { %2881 = vmatpush3.bf16.msra.mxu1 %v3455_v49  ;;  %v476_v49 = vstv %s4301_s15 }
 0x10c   : > { %3009 = vmatpush3.bf16.msra.mxu0 %v3456_v50  ;;  %2882 = vmatprep.subr.bf16.mxu1 %v3457_v52  ;;  %v4324_v50 = vpack.c.bf16 %v493_v37, %v492_v36  ;;  %v3493_v37 = vld [vmem:[#allocation9 + $0xf0] sm:$0xff]  }
 0x10d   : > { %3010 = vmatprep.subr.bf16.mxu0 %v3458_v53 }
 0x10e   : > { %2867 = vmatmul.mubr.bf16.gmra.mrb[8].mxu1 %v4274_v51 }
 0x10f   : > { %2995 = vmatmul.mubr.bf16.gmra.mrb[8].mxu0 %v4279_v54  ;;  %2883 = vmatpush3.bf16.msra.mxu1 %v3457_v52  ;;  %v3475_v52 = vld [vmem:[#allocation9 + $0xa8] sm:$0xff]  }
 0x110   : > { %3011 = vmatpush3.bf16.msra.mxu0 %v3458_v53  ;;  %2884 = vmatprep.subr.bf16.mxu1 %v3459_v55  ;;  %v557_v53 = vld [vmem:[#allocation2 + $0xb2] sm:$0xff] }
 0x111   : > { %3012 = vmatprep.subr.bf16.mxu0 %v3460_v56  ;;  %2870 = vmatprep.mubr.bf16.mxu1 %v4279_v54 }
 0x112   : > { %2998 = vmatprep.mubr.bf16.mxu0 %v4282_v57 }
 0x113   : > { %2885 = vmatpush3.bf16.msra.mxu1 %v3459_v55  ;;  %v4326_v55 = vpack.c.bf16 %v555_v42, %v554_v41  ;;  %v3494_v42 = vld [vmem:[#allocation9 + $0x1f0] sm:$0xff]  }
 0x114   : > { %3013 = vmatpush3.bf16.msra.mxu0 %v3460_v56  ;;  %2886 = vmatprep.subr.bf16.mxu1 %v3461_v58  ;;  %v472_v56 = vld [vmem:[%s353_s4] sm:$0xff] }
 0x115   : > { %3014 = vmatprep.subr.bf16.mxu0 %v3462_v59  ;;  %v4332_v60 = vmul.f32 %v476_v49, %v472_v56 }
 0x116   : > { %2871 = vmatmul.mubr.bf16.gmra.mrb[12].mxu1 %v4282_v57 }
 0x117   : > { %2999 = vmatmul.mubr.bf16.gmra.mrb[12].mxu0 %v4287_v63  ;;  %2887 = vmatpush3.bf16.msra.mxu1 %v3461_v58  ;;  %v473_v58 = vld [vmem:[%s353_s4 + $0x8] sm:$0xff]  ;;  %480 = vst [vmem:[#allocation2 + $0xd9] sm:$0xff] %v4332_v60 }
 0x118   : > { %3015 = vmatpush3.bf16.msra.mxu0 %v3462_v59  ;;  %2888 = vmatprep.subr.bf16.mxu1 %v3463_v1  ;;  %v3476_v59 = vld [vmem:[#allocation9 + $0x1a8] sm:$0xff]   ;;  %v4334_v61 = vmul.f32 %v476_v49, %v473_v58 }
 0x119   : > { %3016 = vmatprep.subr.bf16.mxu0 %v3464_v2  ;;  %2890 = vmatprep.mubr.bf16.mxu1 %v502_v3  ;;  %v3477_v3 = vld [vmem:[#allocation9 + $0xb0] sm:$0xff]   ;;  %v3498_v49 = vld [vmem:[#allocation9 + $0x208] sm:$0xff]  }
 0x11a   : > { %3018 = vmatprep.mubr.bf16.mxu0 %v4290_v4  ;;  %481 = vst [vmem:[#allocation2 + $0xe1] sm:$0xff] %v4334_v61  ;;  %v541_v6 = vpack.c.bf16 %v4334_v61, %v4332_v60 }
 0x11b   : > { %2889 = vmatpush3.bf16.msra.mxu1 %v3463_v1  ;;  %v497_v1 = vld [vmem:[#allocation2 + $0xb0] sm:$0xff] }
 0x11c   : > { %3017 = vmatpush3.bf16.msra.mxu0 %v3464_v2  ;;  %2906 = vmatprep.subr.bf16.mxu1 %v3465_v7  ;;  %v4339_v2 = vpack.c.bf16 %v557_v53, %v556_v47  ;;  %v3497_v47 = vld [vmem:[#allocation9 + $0x200] sm:$0xff]  }
 0x11d   : > { %3034 = vmatprep.subr.bf16.mxu0 %v3466_v10 }
 0x11e   : > { %2891 = vmatmul.mubr.bf16.vlgmr.msra.gmra.mrb[0].mxu1 %v4295_v13 }
 0x11f   : > { %3019 = vmatmul.mubr.bf16.vlgmr.msra.gmra.mrb[0].mxu0 %v4297_v15  ;;  %2907 = vmatpush3.bf16.msra.mxu1 %v3465_v7  ;;  %v559_v7 = vld [vmem:[#allocation2 + $0xca] sm:$0xff] }
 0x120   : > { %3035 = vmatpush3.bf16.msra.mxu0 %v3466_v10  ;;  %2908 = vmatprep.subr.bf16.mxu1 %v3467_v17  ;;  %v4348_v10 = vpack.c.bf16 %v497_v1, %v496_v0  ;;  %v4350_v12 = vpack.c.bf16 %v559_v7, %v558_v5 }
 0x121   : > { %3036 = vmatprep.subr.bf16.mxu0 %v3468_v18  ;;  %2894 = vmatprep.mubr.bf16.mxu1 %v4303_v19  ;;  %v501_v41 = vld [vmem:[#allocation2 + $0xe0] sm:$0xff] }
 0x122   : > { %3022 = vmatprep.mubr.bf16.mxu0 %v4306_v22 }
 0x123   : > { %2909 = vmatpush3.bf16.msra.mxu1 %v3467_v17  ;;  %v562_v17 = vpack.c.bf16 %v543_v11, %v542_v9 }
 0x124   : > { %3037 = vmatpush3.bf16.msra.mxu0 %v3468_v18  ;;  %2910 = vmatprep.subr.bf16.mxu1 %v3469_v23  ;;  %v3481_v18 = vld [vmem:[#allocation9 + $0xc0] sm:$0xff]  }
 0x125   : > { %3038 = vmatprep.subr.bf16.mxu0 %v3470_v26 }
 0x126   : > { %2895 = vmatmul.mubr.bf16.gmra.mrb[4].mxu1 %v4311_v29 }
 0x127   : > { %3023 = vmatmul.mubr.bf16.gmra.mrb[4].mxu0 %v4313_v32  ;;  %2911 = vmatpush3.bf16.msra.mxu1 %v3469_v23  ;;  %v3484_v23 = vld [vmem:[#allocation9 + $0x1c8] sm:$0xff]  }
 0x128   : > { %3039 = vmatpush3.bf16.msra.mxu0 %v3470_v26  ;;  %2912 = vmatprep.subr.bf16.mxu1 %v3471_v30  ;;  %v3487_v26 = vld [vmem:[#allocation9 + $0xd8] sm:$0xff]  }
 0x129   : > { %3040 = vmatprep.subr.bf16.mxu0 %v3472_v34  ;;  %2898 = vmatprep.mubr.bf16.mxu1 %v4315_v35 }
 0x12a   : > { %3026 = vmatprep.mubr.bf16.mxu0 %v4318_v39 }
 0x12b   : > { %2913 = vmatpush3.bf16.msra.mxu1 %v3471_v30  ;;  %v498_v30 = vld [vmem:[#allocation2 + $0xc0] sm:$0xff] }
 0x12c   : > { %3041 = vmatpush3.bf16.msra.mxu0 %v3472_v34  ;;  %2914 = vmatprep.subr.bf16.mxu1 %v3473_v40  ;;  %v3492_v34 = vld [vmem:[#allocation9 + $0x1e8] sm:$0xff]   ;;  %v4364_v36 = vpack.c.bf16 %v499_v31, %v498_v30 }
 0x12d   : > { %3042 = vmatprep.subr.bf16.mxu0 %v3474_v44 }
 0x12e   : > { %2899 = vmatmul.mubr.bf16.gmra.mrb[8].mxu1 %v4324_v50 }
 0x12f   : > { %3027 = vmatmul.mubr.bf16.gmra.mrb[8].mxu0 %v4326_v55  ;;  %2915 = vmatpush3.bf16.msra.mxu1 %v3473_v40  ;;  %v500_v40 = vld [vmem:[#allocation2 + $0xd8] sm:$0xff] }
 0x130   : > { %3043 = vmatpush3.bf16.msra.mxu0 %v3474_v44  ;;  %2916 = vmatprep.subr.bf16.mxu1 %v3475_v52  ;;  %v511_v44 = vpack.c.bf16 %v501_v41, %v500_v40 }
 0x131   : > { %3044 = vmatprep.subr.bf16.mxu0 %v3476_v59  ;;  %2902 = vmatprep.mubr.bf16.mxu1 %v4336_v62 }
 0x132   : > { %3030 = vmatprep.mubr.bf16.mxu0 %v4339_v2 }
 0x133   : > { %2917 = vmatpush3.bf16.msra.mxu1 %v3475_v52  ;;  %v3499_v52 = vld [vmem:[#allocation9 + $0x210] sm:$0xff]  }
 0x134   : > { %3045 = vmatpush3.bf16.msra.mxu0 %v3476_v59  ;;  %2918 = vmatprep.subr.bf16.mxu1 %v3477_v3 }
 0x135   : > { %3046 = vmatprep.subr.bf16.mxu0 %v3478_v8 }
 0x136   : > { %2903 = vmatmul.mubr.bf16.gmra.mrb[12].mxu1 %v4348_v10 }
 0x137   : > { %3031 = vmatmul.mubr.bf16.gmra.mrb[12].mxu0 %v4350_v12  ;;  %2919 = vmatpush3.bf16.msra.mxu1 %v3477_v3 }
 0x138   : > { %3047 = vmatpush3.bf16.msra.mxu0 %v3478_v8  ;;  %2920 = vmatprep.subr.bf16.mxu1 %v3479_v14 }
 0x139   : > { %3048 = vmatprep.subr.bf16.mxu0 %v3480_v16  ;;  %2922 = vmatprep.mubr.bf16.mxu1 %v562_v17 }
 0x13a   : > { %3050 = vmatprep.mubr.bf16.mxu0 %v4303_v19 }
 0x13b   : > { %2921 = vmatpush3.bf16.msra.mxu1 %v3479_v14 }
 0x13c   : > { %3049 = vmatpush3.bf16.msra.mxu0 %v3480_v16  ;;  %2938 = vmatprep.subr.bf16.mxu1 %v3481_v18 }
 0x13d   : > { %3066 = vmatprep.subr.bf16.mxu0 %v3482_v20 }
 0x13e   : > { %2923 = vmatmul.mubr.bf16.vlgmr.msra.gmra.mrb[0].mxu1 %v4290_v4  ;;  %v3489_v4 = vld [vmem:[#allocation9 + $0xe0] sm:$0xff]  }
 0x13f   : > { %3051 = vmatmul.mubr.bf16.vlgmr.msra.gmra.mrb[0].mxu0 %v4311_v29  ;;  %2939 = vmatpush3.bf16.msra.mxu1 %v3481_v18 }
 0x140   : > { %3067 = vmatpush3.bf16.msra.mxu0 %v3482_v20  ;;  %2940 = vmatprep.subr.bf16.mxu1 %v3483_v21 }
 0x141   : > { %3068 = vmatprep.subr.bf16.mxu0 %v3484_v23  ;;  %2926 = vmatprep.mubr.bf16.mxu1 %v4297_v15 }
 0x142   : > { %3054 = vmatprep.mubr.bf16.mxu0 %v4315_v35 }
 0x143   : > { %2941 = vmatpush3.bf16.msra.mxu1 %v3483_v21 }
 0x144   : > { %3069 = vmatpush3.bf16.msra.mxu0 %v3484_v23  ;;  %2942 = vmatprep.subr.bf16.mxu1 %v3485_v24 }
 0x145   : > { %3070 = vmatprep.subr.bf16.mxu0 %v3486_v25 }
 0x146   : > { %2927 = vmatmul.mubr.bf16.gmra.mrb[4].mxu1 %v4306_v22 }
 0x147   : > { %3055 = vmatmul.mubr.bf16.gmra.mrb[4].mxu0 %v4324_v50  ;;  %2943 = vmatpush3.bf16.msra.mxu1 %v3485_v24 }
 0x148   : > { %3071 = vmatpush3.bf16.msra.mxu0 %v3486_v25  ;;  %2944 = vmatprep.subr.bf16.mxu1 %v3487_v26 }
 0x149   : > { %3072 = vmatprep.subr.bf16.mxu0 %v3488_v27  ;;  %2930 = vmatprep.mubr.bf16.mxu1 %v4313_v32 }
 0x14a   : > { %3058 = vmatprep.mubr.bf16.mxu0 %v4336_v62 }
 0x14b   : > { %2945 = vmatpush3.bf16.msra.mxu1 %v3487_v26 }
 0x14c   : > { %3073 = vmatpush3.bf16.msra.mxu0 %v3488_v27  ;;  %2946 = vmatprep.subr.bf16.mxu1 %v3489_v4 }
 0x14d   : > { %3074 = vmatprep.subr.bf16.mxu0 %v3490_v28 }
 0x14e   : > { %2931 = vmatmul.mubr.bf16.gmra.mrb[8].mxu1 %v4318_v39 }
 0x14f   : > { %3059 = vmatmul.mubr.bf16.gmra.mrb[8].mxu0 %v4348_v10  ;;  %2947 = vmatpush3.bf16.msra.mxu1 %v3489_v4 }
 0x150   : > { %3075 = vmatpush3.bf16.msra.mxu0 %v3490_v28  ;;  %2948 = vmatprep.subr.bf16.mxu1 %v3491_v33 }
 0x151   : > { %3076 = vmatprep.subr.bf16.mxu0 %v3492_v34  ;;  %2934 = vmatprep.mubr.bf16.mxu1 %v4326_v55 }
 0x152   : > { %3062 = vmatprep.mubr.bf16.mxu0 %v4364_v36 }
 0x153   : > { %2949 = vmatpush3.bf16.msra.mxu1 %v3491_v33 }
 0x154   : > { %3077 = vmatpush3.bf16.msra.mxu0 %v3492_v34  ;;  %2950 = vmatprep.subr.bf16.mxu1 %v3493_v37 }
 0x155   : > { %3078 = vmatprep.subr.bf16.mxu0 %v3494_v42 }
 0x156   : > { %2935 = vmatmul.mubr.bf16.gmra.mrb[12].mxu1 %v4339_v2 }
 0x157   : > { %3063 = vmatmul.mubr.bf16.gmra.mrb[12].mxu0 %v511_v44  ;;  %2951 = vmatpush3.bf16.msra.mxu1 %v3493_v37 }
 0x158   : > { %3079 = vmatpush3.bf16.msra.mxu0 %v3494_v42  ;;  %2952 = vmatprep.subr.bf16.mxu1 %v3495_v45 }
 0x159   : > { %3080 = vmatprep.subr.bf16.mxu0 %v3496_v46  ;;  %2954 = vmatprep.mubr.bf16.mxu1 %v4295_v13 }
 0x15a   : > { %3082 = vmatprep.mubr.bf16.mxu0 %v4260_v38  ;;  %v3500_v38 = vld [vmem:[#allocation9 + $0x218] sm:$0xff]  }
 0x15b   : > { %2953 = vmatpush3.bf16.msra.mxu1 %v3495_v45 }
 0x15c   : > { %3081 = vmatpush3.bf16.msra.mxu0 %v3496_v46  ;;  %3130 = vmatprep.subr.bf16.mxu1 %v3497_v47 }
 0x15d   : > { %3098 = vmatprep.subr.bf16.mxu0 %v3497_v47 }
 0x15e   : > { %2955 = vmatmul.mubr.bf16.vlgmr.msra.gmra.mrb[0].mxu1 %v4303_v19 }
 0x15f   : > { %3083 = vmatmul.mubr.bf16.vlgmr.msra.gmra.mrb[0].mxu0 %v4264_v43  ;;  %3138 = vmatpush3.bf16.msra.mxu1 %v3497_v47  ;;  %v3501_v43 = vld [vmem:[#allocation9 + $0x220] sm:$0xff]  }
 0x160   : > { %3099 = vmatpush3.bf16.msra.mxu0 %v3497_v47  ;;  %3131 = vmatprep.subr.bf16.mxu1 %v3498_v49 }
 0x161   : > { %3100 = vmatprep.subr.bf16.mxu0 %v3498_v49  ;;  %2958 = vmatprep.mubr.bf16.mxu1 %v4311_v29 }
 0x162   : > { %3086 = vmatprep.mubr.bf16.mxu0 %v4271_v48  ;;  %v3502_v48 = vld [vmem:[#allocation9 + $0x228] sm:$0xff]  }
 0x163   : > { %3139 = vmatpush3.bf16.msra.mxu1 %v3498_v49 }
 0x164   : > { %3101 = vmatpush3.bf16.msra.mxu0 %v3498_v49  ;;  %3132 = vmatprep.subr.bf16.mxu1 %v3499_v52 }
 0x165   : > { %3102 = vmatprep.subr.bf16.mxu0 %v3499_v52 }
 0x166   : > { %2959 = vmatmul.mubr.bf16.gmra.mrb[4].mxu1 %v4315_v35 }
 0x167   : > { %3087 = vmatmul.mubr.bf16.gmra.mrb[4].mxu0 %v4274_v51  ;;  %3140 = vmatpush3.bf16.msra.mxu1 %v3499_v52  ;;  %v3503_v51 = vld [vmem:[#allocation9 + $0x230] sm:$0xff]  }
 0x168   : > { %3103 = vmatpush3.bf16.msra.mxu0 %v3499_v52  ;;  %3133 = vmatprep.subr.bf16.mxu1 %v3500_v38 }
 0x169   : > { %3104 = vmatprep.subr.bf16.mxu0 %v3500_v38  ;;  %2962 = vmatprep.mubr.bf16.mxu1 %v4324_v50 }
 0x16a   : > { %3090 = vmatprep.mubr.bf16.mxu0 %v4279_v54  ;;  %v3504_v54 = vld [vmem:[#allocation9 + $0x238] sm:$0xff]  }
 0x16b   : > { %3141 = vmatpush3.bf16.msra.mxu1 %v3500_v38 }
 0x16c   : > { %3105 = vmatpush3.bf16.msra.mxu0 %v3500_v38  ;;  %3134 = vmatprep.subr.bf16.mxu1 %v3501_v43 }
 0x16d   : > { %3106 = vmatprep.subr.bf16.mxu0 %v3501_v43 }
 0x16e   : > { %2963 = vmatmul.mubr.bf16.gmra.mrb[8].mxu1 %v4336_v62 }
 0x16f   : > { %3091 = vmatmul.mubr.bf16.gmra.mrb[8].mxu0 %v4282_v57  ;;  %3142 = vmatpush3.bf16.msra.mxu1 %v3501_v43  ;;  %v560_v57 = vld [vmem:[#allocation2 + $0xda] sm:$0xff] }
 0x170   : > { %3107 = vmatpush3.bf16.msra.mxu0 %v3501_v43  ;;  %3135 = vmatprep.subr.bf16.mxu1 %v3502_v48 }
 0x171   : > { %3108 = vmatprep.subr.bf16.mxu0 %v3502_v48  ;;  %2966 = vmatprep.mubr.bf16.mxu1 %v4348_v10 }
 0x172   : > { %3094 = vmatprep.mubr.bf16.mxu0 %v4287_v63  ;;  %v561_v63 = vld [vmem:[#allocation2 + $0xe2] sm:$0xff] }
 0x173   : > { %3143 = vmatpush3.bf16.msra.mxu1 %v3502_v48  ;;  %v571_v13 = vpack.c.bf16 %v561_v63, %v560_v57 }
 0x174   : > { %3109 = vmatpush3.bf16.msra.mxu0 %v3502_v48  ;;  %3136 = vmatprep.subr.bf16.mxu1 %v3503_v51 }
 0x175   : > { %3110 = vmatprep.subr.bf16.mxu0 %v3503_v51 }
 0x176   : > { %2967 = vmatmul.mubr.bf16.gmra.mrb[12].mxu1 %v4364_v36 }
 0x177   : > { %3095 = vmatmul.mubr.bf16.gmra.mrb[12].mxu0 %v541_v6  ;;  %3144 = vmatpush3.bf16.msra.mxu1 %v3503_v51 }
 0x178   : > { %3111 = vmatpush3.bf16.msra.mxu0 %v3503_v51  ;;  %3137 = vmatprep.subr.bf16.mxu1 %v3504_v54 }
 0x179   : > { %3112 = vmatprep.subr.bf16.mxu0 %v3504_v54  ;;  %3114 = vmatprep.mubr.bf16.mxu0 %v4297_v15 }
 0x17a   : > { %3122 = vmatprep.mubr.bf16.mxu1 %v4326_v55 }
 0x17b   : > { %3145 = vmatpush3.bf16.msra.mxu1 %v3504_v54 }
 0x17c   : > { %3113 = vmatpush3.bf16.msra.mxu0 %v3504_v54 }
 0x17e   : > { %3123 = vmatmul.mubr.bf16.vlgmr.msra.gmra.mrb[16].mxu1 %v4339_v2 }
 0x17f   : > { %3115 = vmatmul.mubr.bf16.vlgmr.msra.gmra.mrb[0].mxu0 %v4306_v22  ;;  %3126 = vmatprep.mubr.bf16.mxu1 %v4350_v12 }
 0x180   : > { %3118 = vmatprep.mubr.bf16.mxu0 %v4313_v32 }
 0x186   : > { %3127 = vmatmul.mubr.bf16.gmra.mrb[20].mxu1 %v571_v13 }
 0x187   : > { %3119 = vmatmul.mubr.bf16.gmra.mrb[4].mxu0 %v4318_v39 }
 0x231   : > { %v2956_v19 = vpop.f32.mrb[0].mxu1 }
 0x232   : > { %v1172_v15 = vpop.f32.mrb[1].mxu1 }
 0x233   : > { %v2957_v29 = vpop.f32.mrb[2].mxu1 }
 0x234   : > { %v1175_v35 = vpop.f32.mrb[3].mxu1 }
 0x239   : > { %v4395_v50 = vpop.f32.mrb[4].mxu1 }
 0x23a   : > { %v4397_v53 = vpop.f32.mrb[5].mxu1 }
 0x23b   : > { %v4399_v55 = vpop.f32.mrb[6].mxu1 }
 0x23c   : > { %v4401_v22 = vpop.f32.mrb[7].mxu1 }
 0x241   : > { %v2964_v56 = vpop.f32.mrb[8].mxu1 }
 0x242   : > { %v3092_v58 = vpop.f32.mrb[8].mxu0  ;;  %v1204_v59 = vpop.f32.mrb[9].mxu1 }
 0x243   : > { %v3154_v32 = vadd.f32 %v3092_v58, %v2964_v56  ;;  %v1916_v60 = vpop.f32.mrb[9].mxu0  ;;  %v2965_v61 = vpop.f32.mrb[10].mxu1 }
 0x244   : > { %v3156_v62 = vadd.f32 %v1916_v60, %v1204_v59  ;;  %v3093_v39 = vpop.f32.mrb[10].mxu0  ;;  %v1207_v0 = vpop.f32.mrb[11].mxu1 }
 0x245   : > { %v3158_v1 = vadd.f32 %v3093_v39, %v2965_v61  ;;  %v1919_v2 = vpop.f32.mrb[11].mxu0 }
 0x246   : > { %v3160_v3 = vadd.f32 %v1919_v2, %v1207_v0 }
 0x249   : > { %v2968_v5 = vpop.f32.mrb[12].mxu1 }
 0x24a   : > { %v3096_v6 = vpop.f32.mrb[12].mxu0  ;;  %v1220_v7 = vpop.f32.mrb[13].mxu1 }
 0x24b   : > { %v3162_v8 = vadd.f32 %v3096_v6, %v2968_v5  ;;  %v1932_v9 = vpop.f32.mrb[13].mxu0  ;;  %v2969_v10 = vpop.f32.mrb[14].mxu1 }
 0x24c   : > { %v3164_v11 = vadd.f32 %v1932_v9, %v1220_v7  ;;  %v3097_v12 = vpop.f32.mrb[14].mxu0  ;;  %v1223_v14 = vpop.f32.mrb[15].mxu1 }
 0x24d   : > { %v3166_v16 = vadd.f32 %v3097_v12, %v2969_v10  ;;  %v1935_v17 = vpop.f32.mrb[15].mxu0 }
 0x24e   : > { %v4403_v18 = vadd.f32 %v1935_v17, %v1223_v14 }
 0x251   : > { %v3124_v20 = vpop.f32.mrb[16].mxu1 }
 0x252   : > { %v3116_v21 = vpop.f32.mrb[0].mxu0  ;;  %v4405_v23 = vadd.f32 %v3154_v32, %v3124_v20  ;;  %v2094_v24 = vpop.f32.mrb[17].mxu1 }
 0x253   : > { %v3146_v25 = vadd.f32 %v3116_v21, %v2956_v19  ;;  %v2062_v26 = vpop.f32.mrb[1].mxu0  ;;  %v4408_v27 = vadd.f32 %v3156_v62, %v2094_v24  ;;  %v3125_v4 = vpop.f32.mrb[18].mxu1 }
 0x254   : > { %v3147_v28 = vadd.f32 %v2062_v26, %v1172_v15  ;;  %v3117_v30 = vpop.f32.mrb[2].mxu0  ;;  %v4410_v31 = vadd.f32 %v3158_v1, %v3125_v4  ;;  %v2097_v33 = vpop.f32.mrb[19].mxu1 }
 0x255   : > { %v3148_v34 = vadd.f32 %v3117_v30, %v2957_v29  ;;  %v2065_v36 = vpop.f32.mrb[3].mxu0  ;;  %v4412_v37 = vadd.f32 %v3160_v3, %v2097_v33  ;;  %v2165_v38 = vmul.f32 %v3146_v25, %v3146_v25 }
 0x256   : > { %v2679_v40 = vpack.c.bf16 %v4410_v31, %v4405_v23  ;;  %v3149_v41 = vadd.f32 %v2065_v36, %v1175_v35  ;;  %v2163_v45 = vmul.f32 %v3147_v28, %v3147_v28 }
 0x257   : > { %v2659_v42 = vpack.c.bf16 %v3148_v34, %v3146_v25  ;;  %v2674_v44 = vpack.c.bf16 %v4412_v37, %v4408_v27  ;;  %v2166_v29 = vmul.f32 %v3148_v34, %v3148_v34 }
 0x258   : > { %2695 = vst [vmem:[%s4418_s26 + $0x28] sm:$0xff] %v2679_v40   ;;  %v2141_v46 = vadd.f32 %v3149_v41, %v3147_v28  ;;  %v2164_v47 = vmul.f32 %v3149_v41, %v3149_v41  ;;  %v2654_v49 = vpack.c.bf16 %v3149_v41, %v3147_v28 }
 0x259   : > { %2691 = vst [vmem:[%s4418_s26 + $0x8] sm:$0xff] %v2659_v42   ;;  %2694 = vst [vmem:[%s4418_s26 + $0x20] sm:$0xff] %v2674_v44   ;;  %v3128_v52 = vpop.f32.mrb[20].mxu1 }
 0x25a   : > { %v2142_v43 = vadd.f32 %v3146_v25, %v2141_v46  ;;  %v2179_v48 = vadd.f32 %v2164_v47, %v2163_v45  ;;  %2655 = vst [vmem:[%s4418_s26] sm:$0xff] %v2654_v49   ;;  %v3120_v51 = vpop.f32.mrb[4].mxu0  ;;  %v4424_v54 = vadd.f32 %v3162_v8, %v3128_v52  ;;  %v2110_v57 = vpop.f32.mrb[21].mxu1 }
 0x25b   : > { %v3150_v63 = vadd.f32 %v3120_v51, %v4395_v50  ;;  %v2078_v13 = vpop.f32.mrb[5].mxu0  ;;  %v4429_v19 = vadd.f32 %v3164_v11, %v2110_v57  ;;  %v3129_v15 = vpop.f32.mrb[22].mxu1 }
 0x25c   : > { %v2180_v35 = vadd.f32 %v2179_v48, %v2165_v38  ;;  %v3151_v56 = vadd.f32 %v2078_v13, %v4397_v53  ;;  %v2143_v58 = vadd.f32 %v3148_v34, %v2142_v43  ;;  %v3121_v59 = vpop.f32.mrb[6].mxu0  ;;  %v2113_v32 = vpop.f32.mrb[23].mxu1  ;;  %v4433_v61 = vadd.f32 %v3166_v16, %v3129_v15 }
 0x25d   : > { %v3152_v60 = vadd.f32 %v3121_v59, %v4399_v55  ;;  %v2081_v62 = vpop.f32.mrb[7].mxu0  ;;  %v3169_v7 = vadd.f32 %v4403_v18, %v2113_v32  ;;  %v2169_v8 = vmul.f32 %v3150_v63, %v3150_v63  ;;  %v2171_v16 = vmul.f32 %v4408_v27, %v4408_v27 }
 0x25e   : > { %v2144_v50 = vadd.f32 %v3151_v56, %v2143_v58  ;;  %v2167_v39 = vmul.f32 %v3151_v56, %v3151_v56  ;;  %v2181_v0 = vadd.f32 %v2180_v35, %v2166_v29  ;;  %v3153_v1 = vadd.f32 %v2081_v62, %v4401_v22 }
 0x25f   : > { %v2669_v2 = vpack.c.bf16 %v3152_v60, %v3150_v63  ;;  %v2689_v53 = vpack.c.bf16 %v4433_v61, %v4424_v54  ;;  %v2684_v10 = vpack.c.bf16 %v3169_v7, %v4429_v19  ;;  %v2170_v11 = vmul.f32 %v3152_v60, %v3152_v60 }
 0x260   : > { %v2182_v3 = vadd.f32 %v2181_v0, %v2167_v39  ;;  %v2145_v5 = vadd.f32 %v3153_v1, %v2144_v50  ;;  %v2168_v55 = vmul.f32 %v3153_v1, %v3153_v1  ;;  %v2664_v6 = vpack.c.bf16 %v3153_v1, %v3151_v56 }
 0x261   : > { %2693 = vst [vmem:[%s4418_s26 + $0x18] sm:$0xff] %v2669_v2   ;;  %2697 = vst [vmem:[%s4418_s26 + $0x38] sm:$0xff] %v2689_v53  }
 0x262   : > { %v2146_v9 = vadd.f32 %v3150_v63, %v2145_v5  ;;  %v2183_v22 = vadd.f32 %v2182_v3, %v2168_v55  ;;  %2692 = vst [vmem:[%s4418_s26 + $0x10] sm:$0xff] %v2664_v6   ;;  %2696 = vst [vmem:[%s4418_s26 + $0x30] sm:$0xff] %v2684_v10  }
 0x264   : > { %v2147_v12 = vadd.f32 %v3152_v60, %v2146_v9  ;;  %v2184_v14 = vadd.f32 %v2183_v22, %v2169_v8 }
 0x266   : > { %v2148_v17 = vadd.f32 %v4408_v27, %v2147_v12  ;;  %v2185_v18 = vadd.f32 %v2184_v14, %v2170_v11 }
 0x267   : > { %3636 = shalt.err (!%p3633_p0)
}
 0x268   : > { %s3637_s7 = scalar_lea.hbm %s4449_s5, 1024  ;;  %s3641_s15 = scalar_lea.hbm %s4679_s2, 4096 }
 0x269   : > { %p3638_p9 = scmp.ne.s32.totalorder %s4449_s5, %s3637_s7  ;;  %p3642_p10 = scmp.lt.u32.totalorder %s4449_s5, %s4679_s2 }
 0x26a   : > { %p3643_p7 = scmp.lt.u32.totalorder %s3641_s15, %s3637_s7  ;;  %p3645_p13 = scmp.lt.u32.totalorder %s3637_s7, %s4449_s5 }
 0x26b   : > { %p3639_p5 = pnand %p3638_p9, %p4680_p12 }
 0x26c   : > { %p3644_p1 = por %p3643_p7, %p3642_p10 }
 0x26d   : > { %p3640_p4 = pneg %p3639_p5 }
 0x26e   : > { %p3646_p8 = por %p3645_p13, %p3644_p1 }
 0x270   : > { %p3647_p11 = pnand %p3646_p8, %p3640_p4 }
 0x272   : > { %3650 = shalt.err (!%p3647_p11)
}
 0x273   : > { %s3825_s30 = smov 64   ;;  %s3826_s3 = smov 4   ;;  %v2172_v20 = vmul.f32 %v4412_v37, %v4412_v37  ;;  %v2186_v21 = vadd.f32 %v2185_v18, %v2171_v16  ;;  %v2149_v24 = vadd.f32 %v4412_v37, %v2148_v17  ;;  %v2173_v25 = vmul.f32 %v4405_v23, %v4405_v23 }
 0x274   : > { %3284 = dma.vmem_to_hbm [thread:$0]  (%p4680_p12), %s4443_s1, 1024, %s4449_s5, %s2282_s21, %s3825_s30, %s3825_s30, %s3826_s3   ;;  %v2174_v4 = vmul.f32 %v4410_v31, %v4410_v31  ;;  %v2175_v33 = vmul.f32 %v4429_v19, %v4429_v19  ;;  %v2176_v40 = vmul.f32 %v3169_v7, %v3169_v7 }
 0x275   : > { %v2150_v26 = vadd.f32 %v4405_v23, %v2149_v24  ;;  %v2187_v27 = vadd.f32 %v2186_v21, %v2172_v20  ;;  %v2177_v23 = vmul.f32 %v4424_v54, %v4424_v54  ;;  %s2534_s17 = sshll.u32 %s4212_s10, 1  ;;  %s2629_s1 = sshll.u32 %s4677_s29, 1 }
 0x276   : > { %s2317_s27 = sadd.s32 %s4676_s19, %s2629_s1  ;;  %s398_s11 = scalar_lea.vmem [#allocation12], %s2534_s17 }
 0x277   : > { %v2151_v28 = vadd.f32 %v4410_v31, %v2150_v26  ;;  %v2188_v30 = vadd.f32 %v2187_v27, %v2173_v25  ;;  %v2178_v31 = vmul.f32 %v4433_v61, %v4433_v61  ;;  %s2630_s12 = sshll.u32 %s2317_s27, 5  ;;  %s2321_s28 = sshll.u32 %s398_s11, 4  ;;  %s4505_s28 = int_to_ptr.vmem [resolvable:$true] %s2321_s28 }
 0x278   : > { %s4681_s14 = sld [smem:[#allocation41_spill]]  ;;  %s2287_s19 = scalar_lea.sflag [#allocation13], %s4212_s10 }
 0x279   : > { %v2152_v34 = vadd.f32 %v4429_v19, %v2151_v28  ;;  %v2189_v36 = vadd.f32 %v2188_v30, %v2174_v4  ;;  %s3651_s18 = scalar_lea.vmem %s4505_s28, 32  ;;  %s3827_s20 = smov [#allocation12]  }
 0x27a   : > { %p3652_p6 = scmp.ne.s32.totalorder %s4505_s28, %s3651_s18  ;;  %s3655_s0 = sshll.u32 %s3827_s20, 4  ;;  %s3656_s0 = int_to_ptr.vmem [resolvable:$false] %s3655_s0 }
 0x27b   : > { %v2153_v37 = vadd.f32 %v3169_v7, %v2152_v34  ;;  %v2190_v41 = vadd.f32 %v2189_v36, %v2175_v33  ;;  %s3657_s7 = scalar_lea.vmem %s3656_s0, 64  ;;  %p3658_p0 = scmp.lt.s32.totalorder %s4505_s28, %s3656_s0 }
 0x27c   : > { %p3653_p2 = pnand %p3652_p6, %p4680_p12  ;;  %p3659_p9 = scmp.lt.s32.totalorder %s3657_s7, %s3651_s18 }
 0x27d   : > { %v2154_v42 = vadd.f32 %v4424_v54, %v2153_v37  ;;  %v2191_v44 = vadd.f32 %v2190_v41, %v2176_v40 }
 0x27e   : > { %s4503_s29 = scalar_lea.hbm %s4681_s14, %s2630_s12  ;;  %p3654_p3 = pneg %p3653_p2 }
 0x27f   : > { %v2155_v45 = vadd.f32 %v4433_v61, %v2154_v42  ;;  %v2192_v46 = vadd.f32 %v2191_v44, %v2177_v23  ;;  %p3660_p5 = por %p3659_p9, %p3658_p0 }
 0x281   : > { %v2156_v47 = vrot.slane %v2155_v45, 4  ;;  %v2193_v49 = vadd.f32 %v2192_v46, %v2178_v31  ;;  %p3661_p4 = pnand %p3660_p5, %p3654_p3 }
 0x283   : > { %v2157_v52 = vadd.f32 %v2156_v47, %v2155_v45  ;;  %v2194_v38 = vrot.slane %v2193_v49, 4 }
 0x285   : > { %v2158_v43 = vrot.slane %v2157_v52, 2  ;;  %v2195_v48 = vadd.f32 %v2194_v38, %v2193_v49 }
 0x287   : > { %v2159_v51 = vadd.f32 %v2158_v43, %v2157_v52  ;;  %v2196_v57 = vrot.slane %v2195_v48, 2 }
 0x289   : > { %v2160_v54 = vrot.slane %v2159_v51, 1  ;;  %v2197_v63 = vadd.f32 %v2196_v57, %v2195_v48 }
 0x28b   : > { %v2161_v13 = vadd.f32 %v2160_v54, %v2159_v51  ;;  %v2198_v19 = vrot.slane %v2197_v63, 1 }
 0x28d   : > { %2162 = vst [vmem:[%s398_s11] sm:$0x1] %v2161_v13  ;;  %v2199_v15 = vadd.f32 %v2198_v19, %v2197_v63 }
 0x28f   : > { %2200 = vst [vmem:[%s398_s11 + $0x1] sm:$0x1] %v2199_v15 }
 0x290   : > { %3664 = shalt.err (!%p3661_p4)
}
 0x291   : > { %s3665_s10 = scalar_lea.hbm %s4503_s29, 32  ;;  %s3669_s15 = scalar_lea.hbm %s4681_s14, 128 }
 0x292   : > { %p3666_p10 = scmp.ne.s32.totalorder %s4503_s29, %s3665_s10  ;;  %p3670_p13 = scmp.lt.u32.totalorder %s4503_s29, %s4681_s14 }
 0x293   : > { %p3671_p8 = scmp.lt.u32.totalorder %s3669_s15, %s3665_s10  ;;  %p3673_p6 = scmp.lt.u32.totalorder %s3665_s10, %s4503_s29 }
 0x294   : > { %p3667_p7 = pnand %p3666_p10, %p4680_p12 }
 0x295   : > { %p3672_p11 = por %p3671_p8, %p3670_p13 }
 0x296   : > { %p3668_p1 = pneg %p3667_p7 }
 0x297   : > { %p3674_p2 = por %p3673_p6, %p3672_p11 }
 0x299   : > { %p3675_p3 = pnand %p3674_p2, %p3668_p1 }
 0x29b   : > { %3678 = shalt.err (!%p3675_p3)
}
 0x29c   : > { %3285 = dma.vmem_to_hbm [thread:$0]  (%p4680_p12), %s4505_s28, 32, %s4503_s29, %s2287_s19  }
 0x29d PF: > { %s4682_s30 = sld [smem:[#allocation35_spill]]  ;;  %p3312_p0 = scmp.ge.s32.totalorder %s3813_s6, 2 }
 0x29e   : > { %s2333_s3 = sand.u32 1, %s3785_s24  }
 0x29f   : > { %s2334_s17 = scalar_lea.sflag [#allocation5], %s2333_s3 }
 0x2a3   : > { %p4683_p9 = scmp.ne.s32.totalorder %s4682_s30, 0 }
 0x2a5   : > { %p3303_p5 = pnand %p3312_p0, %p4683_p9 }
 0x2a7   : > { %3752 = dma.done.wait (!%p3303_p5), %s2334_s17, 1024  }
 0x2a8   : > { %3754 = vsyncadd (!%p3303_p5), %s2334_s17, 4294966272  ;;  %s2343_s1 = scalar_lea.sflag [#allocation13], %s2333_s3 }
 0x2a9   : > { %3756 = dma.done.wait (!%p3303_p5), %s2343_s1, 32  }
 0x2aa   : > { %3758 = vsyncadd (!%p3303_p5), %s2343_s1, 4294967264  ;;  %s29_s6 = sadd.s32 1, %s3813_s6   ;;  %s4685_s18 = sld [smem:[#allocation21_spill]] }
 0x2ab   : > { %p4534_p4 = scmp.ge.s32.totalorder %s29_s6, 6   ;;  %s4686_s19 = sld [smem:[#allocation22_spill]] }
 0x2ac   : > { %s4687_s27 = sld [smem:[#allocation23_spill]]  ;;  %s4688_s23 = sld [smem:[#allocation33_spill]] }
 0x2ad   : > { %s4689_s12 = sld [smem:[#allocation24_spill]]  ;;  %s4690_s26 = sld [smem:[#allocation34_spill]] }
 0x2ae   : > { %s4691_s11 = sld [smem:[#allocation27_spill]]  ;;  %s4692_s28 = sld [smem:[#allocation28_spill]] }
 0x2af   : > { %s4693_s29 = sld [smem:[#allocation29_spill]]  ;;  %s4694_s30 = sld [smem:[#allocation30_spill]] }
 0x2b0   : > { %s4695_s20 = smov %s4716_s9  ;;  %s4696_s21 = smov %s3777_s22 }
 0x2b1   : > { %s4698_s24 = smov %s3789_s25  ;;  %28 = sbr.rel (!%p4534_p4) target bundleno = 22 (0x16), region = 136 }
 0x2b2   : > { %s4697_s22 = smov %s4687_s27 }
 0x2b3   : > { %s4699_s25 = smov %s4689_s12 }
 0x2b4   : > { %s4700_s27 = smov %s4691_s11 }
 0x2b8   :  { %2348 = vsyncpa [#allocation4], 1 }
 0x2b9   :  { %2350 = vsyncpa [#allocation4 + $0x1], 1 }
 0x2ba   :  { %2351 = vsyncpa [#allocation7], 1 }
 0x2bb   :  { %2353 = vsyncpa [#allocation7 + $0x1], 1 }
 0x2bc   :  { %2354 = vsyncpa [#allocation10], 1 }
 0x2bd   :  { %2355 = vsyncpa [#allocation5], 1 }
 0x2be   :  { %2357 = vsyncpa [#allocation5 + $0x1], 1 }
 0x2bf   :  { %2358 = vsyncpa [#allocation13], 1 }
 0x2c0   :  { %2360 = vsyncpa [#allocation13 + $0x1], 1 }

</bundles_post_ra>
